<compile_context>
chip_gen: v6e
topology: v6e:2x2x1
jax: 0.10.0
libtpu: 0.0.40
codegen_flags: <defaults>
</compile_context>

<pallas_src>
import functools
import math

import jax
import jax.numpy as jnp
import numpy as np
from jax import lax
from jax.experimental import pallas as pl
from jax.experimental.pallas import tpu as pltpu

D_MODEL = 32
NUM_HEADS = 4
D_FF = 64
D_K = D_MODEL // NUM_HEADS
EPS = 1e-6

# ---- packed weight-slab row layout (all offsets 8-aligned; lane width 64) ----
SLAB_W = max(2 * D_MODEL, D_FF)            # 64
ROW_WQ = 0                                  # (D, D)    lanes [0, D)
ROW_WKV = ROW_WQ + D_MODEL                  # (D, 2D)   fused K|V weight
ROW_WO = ROW_WKV + D_MODEL                  # (D, D)
ROW_W1 = ROW_WO + D_MODEL                   # (D, DFF)
ROW_W2 = ROW_W1 + D_MODEL                   # (DFF, D)
ROW_BQ = ROW_W2 + D_FF                      # biases, one per 8-row block
ROW_BKV = ROW_BQ + 8
ROW_BO = ROW_BKV + 8
ROW_B1 = ROW_BO + 8
ROW_B2 = ROW_B1 + 8
ROW_HM = ROW_B2 + 8                         # (H, D) one-hot head lane mask
SLAB_ROWS = ROW_HM + 8                      # 240 rows x 64 lanes x f32 ~ 60 KiB


def _decoder_layer_kernel(nq, nenc, xe_ref, masks_ref, w_ref, ln_ref, out_ref):
    D = D_MODEL
    H = NUM_HEADS
    scale = 1.0 / math.sqrt(D_K)

    x = xe_ref[0:nq, :]                              # (nq, D)   batch folded onto rows
    enc = xe_ref[nq:nq + nenc, :]                    # (nenc, D)
    add_t = masks_ref[0:H * nq, 0:nq]                # (H*nq, nq)   additive 0 / -1e9
    add_s = masks_ref[H * nq:2 * H * nq, 0:nenc]     # (H*nq, nenc)

    # ---- packed weights: static ref-window views of a single prologue DMA ----
    wq = w_ref[ROW_WQ:ROW_WQ + D, 0:D]
    wkv = w_ref[ROW_WKV:ROW_WKV + D, 0:2 * D]
    wo = w_ref[ROW_WO:ROW_WO + D, 0:D]
    w1 = w_ref[ROW_W1:ROW_W1 + D, 0:D_FF]
    w2 = w_ref[ROW_W2:ROW_W2 + D_FF, 0:D]
    bq = w_ref[ROW_BQ:ROW_BQ + 1, 0:D]
    bkv = w_ref[ROW_BKV:ROW_BKV + 1, 0:2 * D]
    bo = w_ref[ROW_BO:ROW_BO + 1, 0:D]
    b1 = w_ref[ROW_B1:ROW_B1 + 1, 0:D_FF]
    b2 = w_ref[ROW_B2:ROW_B2 + 1, 0:D]
    hm = w_ref[ROW_HM:ROW_HM + H, 0:D]               # (H, D) one-hot head lane mask

    def layernorm(v, alpha, bias):
        # Mirrors the PyTorch LayerNormalisation: unbiased (N-1) std, eps added
        # to std (not var), scalar alpha/bias.
        n = v.shape[-1]
        mean = jnp.mean(v, axis=-1, keepdims=True)
        var = jnp.sum((v - mean) ** 2, axis=-1, keepdims=True) * (1.0 / (n - 1))
        inv = pl.reciprocal(jnp.sqrt(var) + EPS)     # exact recip; mul instead of div
        return alpha * (v - mean) * inv + bias

    def mha(xq, kv, addmask):
        """Head-batched attention: heads stacked on the sublane axis, ONE softmax,
        4 MXU pushes total (q-proj, scores, PV, out-proj)."""
        nq_ = xq.shape[0]
        q = jnp.dot(xq, wq, preferred_element_type=jnp.float32) + bq        # (nq, D)
        # Block-diagonal head stacking: row block h keeps only head h's lanes.
        q_blk = jnp.concatenate([q * hm[h:h + 1, :] for h in range(H)], axis=0)  # (H*nq, D)
        k = kv[:, 0:D]                                                      # (nk, D)
        v = kv[:, D:2 * D]                                                  # (nk, D)
        # Scores for ALL heads in one K=D push: row block h == q_h @ k_h^T.
        s = lax.dot_general(q_blk, k, (((1,), (1,)), ((), ())),
                            preferred_element_type=jnp.float32) * scale
        s = s + addmask                                    # additive mask (no compare/select)
        s = s - jnp.max(s, axis=-1, keepdims=True)         # kept for numerical safety
        e = jnp.exp(s)
        p = e * pl.reciprocal(jnp.sum(e, axis=-1, keepdims=True), approx=True)
        # PV for all heads in one push; row block h, lane block g holds p_h @ v_g.
        om = jnp.dot(p, v, preferred_element_type=jnp.float32)              # (H*nq, D)
        # Keep only the matching-head lane block of each row block, fold heads back.
        o = om[0:nq_, :] * hm[0:1, :]
        for h in range(1, H):
            o = o + om[h * nq_:(h + 1) * nq_, :] * hm[h:h + 1, :]           # (nq, D)
        # TODO(synk): nn.Dropout (train mode) has no deterministic equivalent; eval = identity.
        return jnp.dot(o, wo, preferred_element_type=jnp.float32) + bo

    # Residual 1: self-attention on pre-layernormed x.
    xn = layernorm(x, ln_ref[0], ln_ref[1])

    # Fused K/V projection for BOTH attentions (enc-side K/V does not depend on
    # residual 1, so it is hoisted and computed in the same matmul).
    kv_all = jnp.dot(jnp.concatenate([xn, enc], axis=0), wkv,
                     preferred_element_type=jnp.float32) + bkv              # (nq+nenc, 2D)

    h1 = x + mha(xn, kv_all[0:nq, :], add_t)

    # Residual 2: cross-attention.  NOTE: the reference forward reuses self.mha
    # (NOT self.cross_mha), so the same projection weights are intentionally reused.
    h1n = layernorm(h1, ln_ref[2], ln_ref[3])
    h2 = h1 + mha(h1n, kv_all[nq:nq + nenc, :], add_s)

    # Residual 3: feed-forward (linear -> relu -> linear).
    h2n = layernorm(h2, ln_ref[4], ln_ref[5])
    hid = jnp.maximum(jnp.dot(h2n, w1, preferred_element_type=jnp.float32) + b1, 0.0)
    ff = jnp.dot(hid, w2, preferred_element_type=jnp.float32) + b2
    out_ref[...] = h2 + ff


# ------------------------- one-time (hoisted) setup -------------------------
def pack_decoder_params(params):
    """Pack all weights/biases into one lane-padded VMEM slab + flat (6,) LN vector."""
    wq, bq, wk, bk, wv, bv, wo, bo, w1, b1, w2, b2, ln = params
    slab = np.zeros((SLAB_ROWS, SLAB_W), np.float32)

    def put(row, a):
        a = np.asarray(a, np.float32)
        slab[row:row + a.shape[0], :a.shape[1]] = a

    put(ROW_WQ, wq)
    put(ROW_WKV, np.concatenate([np.asarray(wk), np.asarray(wv)], axis=1))
    put(ROW_WO, wo)
    put(ROW_W1, w1)
    put(ROW_W2, w2)
    put(ROW_BQ, bq)
    put(ROW_BKV, np.concatenate([np.asarray(bk), np.asarray(bv)], axis=1))
    put(ROW_BO, bo)
    put(ROW_B1, b1)
    put(ROW_B2, b2)
    head_mask = (np.arange(D_MODEL)[None, :] // D_K == np.arange(NUM_HEADS)[:, None])
    put(ROW_HM, head_mask.astype(np.float32))
    ln_vec = np.asarray(ln, np.float32).reshape(-1)      # [a1,b1,a2,b2,a3,b3]
    return jnp.asarray(slab), jnp.asarray(ln_vec)


def build_additive_masks(src_mask, tgt_mask):
    """Block-diagonal-over-batch ADDITIVE masks (0 allowed / -1e9 masked), tiled
    over heads on the sublane axis and packed into one array.
      rows [0, H*B*S)        -> self-attention mask  (H*B*S, B*S)
      rows [H*B*S, 2*H*B*S)  -> cross-attention mask (H*B*S, B*Senc)  (lane-padded)."""
    tgt = np.asarray(tgt_mask, np.float32)     # (B, 1, S, S)
    src = np.asarray(src_mask, np.float32)     # (B, 1, S, Senc)
    B, _, S, _ = tgt.shape
    Senc = src.shape[-1]
    eye = np.eye(B, dtype=np.float32)
    tallow = (eye[:, None, :, None] * tgt[:, 0][:, :, None, :]).reshape(B * S, B * S)
    sallow = (eye[:, None, :, None] * src[:, 0][:, :, None, :]).reshape(B * S, B * Senc)
    add_t = np.tile((tallow - 1.0) * 1e9, (NUM_HEADS, 1))     # (H*B*S, B*S)
    add_s = np.tile((sallow - 1.0) * 1e9, (NUM_HEADS, 1))     # (H*B*S, B*Senc)
    width = max(B * S, B * Senc)
    packed = np.zeros((2 * NUM_HEADS * B * S, width), np.float32)
    packed[:NUM_HEADS * B * S, :B * S] = add_t
    packed[NUM_HEADS * B * S:, :B * Senc] = add_s
    return jnp.asarray(packed)


def decoder_layer_call(xe, masks, w_slab, ln_vec, nq, nenc):
    kernel = functools.partial(_decoder_layer_kernel, nq, nenc)
    vmem = pltpu.MemorySpace.VMEM
    smem = pltpu.MemorySpace.SMEM
    return pl.pallas_call(
        kernel,
        out_shape=jax.ShapeDtypeStruct((nq, D_MODEL), jnp.float32),
        in_specs=[pl.BlockSpec(memory_space=vmem),   # activations [x ; enc]
                  pl.BlockSpec(memory_space=vmem),   # packed additive masks
                  pl.BlockSpec(memory_space=vmem),   # packed weight slab
                  pl.BlockSpec(memory_space=smem)],  # flat layernorm scalars
        out_specs=pl.BlockSpec(memory_space=vmem),
    )(xe, masks, w_slab, ln_vec)


def make_decoder_layer(params, src_mask, tgt_mask):
    """One-time setup (weight packing + mask construction).  Returns a jitted
    per-step forward so no static preprocessing sits on the call path."""
    w_slab, ln_vec = pack_decoder_params(params)
    masks = build_additive_masks(src_mask, tgt_mask)

    @jax.jit
    def forward(x, enc):
        B, S, Dm = x.shape
        Senc = enc.shape[1]
        xe = jnp.concatenate([x.reshape(B * S, Dm), enc.reshape(B * Senc, Dm)], axis=0)
        out = decoder_layer_call(xe, masks, w_slab, ln_vec, B * S, B * Senc)
        return out.reshape(B, S, Dm)

    return forward


# ------------------------------ pure-JAX reference ------------------------------
def decoder_layer_reference(x, enc, src_mask, tgt_mask, params):
    """Pure-JAX reference mirroring the PyTorch module (eval mode), per batch."""
    wq, bq, wk, bk, wv, bv, wo, bo, w1, b1, w2, b2, ln = params

    def layernorm(v, a, bb):
        n = v.shape[-1]
        mean = jnp.mean(v, -1, keepdims=True)
        var = jnp.sum((v - mean) ** 2, -1, keepdims=True) / (n - 1)
        return a * (v - mean) / (jnp.sqrt(var) + EPS) + bb

    def mha(xq, xkv, mask):
        q = xq @ wq + bq
        k = xkv @ wk + bk
        v = xkv @ wv + bv
        B, Sq, _ = q.shape
        Sk = k.shape[1]
        q = q.reshape(B, Sq, NUM_HEADS, D_K).transpose(0, 2, 1, 3)
        k = k.reshape(B, Sk, NUM_HEADS, D_K).transpose(0, 2, 1, 3)
        v = v.reshape(B, Sk, NUM_HEADS, D_K).transpose(0, 2, 1, 3)
        s = jnp.einsum('bhqd,bhkd->bhqk', q, k) / math.sqrt(D_K)
        s = jnp.where(mask == 0.0, -1e9, s)
        p = jax.nn.softmax(s, axis=-1)
        o = jnp.einsum('bhqk,bhkd->bhqd', p, v)
        o = o.transpose(0, 2, 1, 3).reshape(B, Sq, D_MODEL)
        return o @ wo + bo

    xn = layernorm(x, ln[0, 0], ln[0, 1])
    h1 = x + mha(xn, xn, tgt_mask)
    h1n = layernorm(h1, ln[1, 0], ln[1, 1])
    h2 = h1 + mha(h1n, enc, src_mask)
    h2n = layernorm(h2, ln[2, 0], ln[2, 1])
    ff = jnp.maximum(h2n @ w1 + b1, 0.0) @ w2 + b2
    return h2 + ff


if __name__ == "__main__":
    B, S_TGT, S_SRC = 2, 8, 8

    key = jax.random.PRNGKey(0)
    keys = jax.random.split(key, 16)

    def init(k, shape, scale=0.05):
        return (scale * jax.random.normal(k, shape)).astype(jnp.float32)

    x = jax.random.normal(keys[0], (B, S_TGT, D_MODEL), jnp.float32)
    enc = jax.random.normal(keys[1], (B, S_SRC, D_MODEL), jnp.float32)
    tgt_mask = jnp.tile(jnp.tril(jnp.ones((S_TGT, S_TGT), jnp.float32))[None, None],
                        (B, 1, 1, 1))                               # causal
    src_mask = jnp.ones((B, 1, S_TGT, S_SRC), jnp.float32)          # no masking

    params = (
        init(keys[2], (D_MODEL, D_MODEL)), init(keys[3], (1, D_MODEL)),   # wq, bq
        init(keys[4], (D_MODEL, D_MODEL)), init(keys[5], (1, D_MODEL)),   # wk, bk
        init(keys[6], (D_MODEL, D_MODEL)), init(keys[7], (1, D_MODEL)),   # wv, bv
        init(keys[8], (D_MODEL, D_MODEL)), init(keys[9], (1, D_MODEL)),   # wo, bo
        init(keys[10], (D_MODEL, D_FF)),   init(keys[11], (1, D_FF)),     # linear1
        init(keys[12], (D_FF, D_MODEL)),   init(keys[13], (1, D_MODEL)),  # linear2
        jnp.array([[1.0, 0.0]] * 3, jnp.float32),                         # LN alpha/bias x3
    )

    forward = make_decoder_layer(params, src_mask, tgt_mask)   # one-time setup (hoisted)
    out = jax.block_until_ready(forward(x, enc))

    ref = jax.block_until_ready(decoder_layer_reference(x, enc, src_mask, tgt_mask, params))
    np.testing.assert_allclose(np.asarray(out), np.asarray(ref), rtol=2e-3, atol=2e-3)

    print("KERNEL_OK")
</pallas_src>

<mosaic_0001>
module attributes {stable_mosaic.version = 11 : i64} {
  func.func @_decoder_layer_kernel(%arg0: memref<32x32xf32, #tpu.memory_space<vmem>>, %arg1: memref<128x16xf32, #tpu.memory_space<vmem>>, %arg2: memref<240x64xf32, #tpu.memory_space<vmem>>, %arg3: memref<6xf32, #tpu.memory_space<smem>>, %arg4: memref<16x32xf32, #tpu.memory_space<vmem>>) attributes {dimension_semantics = [], scalar_prefetch = 0 : i64, scratch_operands = 0 : i64, tpu.core_type = #tpu.core_type<tc>} {
    %c0 = arith.constant 0 : index
    %c0_0 = arith.constant 0 : index
    %0 = vector.load %arg0[%c0, %c0_0] : memref<32x32xf32, #tpu.memory_space<vmem>>, vector<16x32xf32>
    %c16 = arith.constant 16 : index
    %c0_1 = arith.constant 0 : index
    %1 = vector.load %arg0[%c16, %c0_1] : memref<32x32xf32, #tpu.memory_space<vmem>>, vector<16x32xf32>
    %c0_2 = arith.constant 0 : index
    %c0_3 = arith.constant 0 : index
    %2 = vector.load %arg1[%c0_2, %c0_3] : memref<128x16xf32, #tpu.memory_space<vmem>>, vector<64x16xf32>
    %c64 = arith.constant 64 : index
    %c0_4 = arith.constant 0 : index
    %3 = vector.load %arg1[%c64, %c0_4] : memref<128x16xf32, #tpu.memory_space<vmem>>, vector<64x16xf32>
    %c0_5 = arith.constant 0 : index
    %c0_6 = arith.constant 0 : index
    %4 = vector.load %arg2[%c0_5, %c0_6] : memref<240x64xf32, #tpu.memory_space<vmem>>, vector<32x32xf32>
    %c32 = arith.constant 32 : index
    %c0_7 = arith.constant 0 : index
    %5 = vector.load %arg2[%c32, %c0_7] : memref<240x64xf32, #tpu.memory_space<vmem>>, vector<32x64xf32>
    %c64_8 = arith.constant 64 : index
    %c0_9 = arith.constant 0 : index
    %6 = vector.load %arg2[%c64_8, %c0_9] : memref<240x64xf32, #tpu.memory_space<vmem>>, vector<32x32xf32>
    %c96 = arith.constant 96 : index
    %c0_10 = arith.constant 0 : index
    %7 = vector.load %arg2[%c96, %c0_10] : memref<240x64xf32, #tpu.memory_space<vmem>>, vector<32x64xf32>
    %c128 = arith.constant 128 : index
    %c0_11 = arith.constant 0 : index
    %8 = vector.load %arg2[%c128, %c0_11] : memref<240x64xf32, #tpu.memory_space<vmem>>, vector<64x32xf32>
    %c192 = arith.constant 192 : index
    %c0_12 = arith.constant 0 : index
    %9 = vector.load %arg2[%c192, %c0_12] : memref<240x64xf32, #tpu.memory_space<vmem>>, vector<1x32xf32>
    %c200 = arith.constant 200 : index
    %c0_13 = arith.constant 0 : index
    %10 = vector.load %arg2[%c200, %c0_13] : memref<240x64xf32, #tpu.memory_space<vmem>>, vector<1x64xf32>
    %c208 = arith.constant 208 : index
    %c0_14 = arith.constant 0 : index
    %11 = vector.load %arg2[%c208, %c0_14] : memref<240x64xf32, #tpu.memory_space<vmem>>, vector<1x32xf32>
    %c216 = arith.constant 216 : index
    %c0_15 = arith.constant 0 : index
    %12 = vector.load %arg2[%c216, %c0_15] : memref<240x64xf32, #tpu.memory_space<vmem>>, vector<1x64xf32>
    %c224 = arith.constant 224 : index
    %c0_16 = arith.constant 0 : index
    %13 = vector.load %arg2[%c224, %c0_16] : memref<240x64xf32, #tpu.memory_space<vmem>>, vector<1x32xf32>
    %c232 = arith.constant 232 : index
    %c0_17 = arith.constant 0 : index
    %14 = vector.load %arg2[%c232, %c0_17] : memref<240x64xf32, #tpu.memory_space<vmem>>, vector<4x32xf32>
    %c0_18 = arith.constant 0 : index
    %15 = memref.load %arg3[%c0_18] : memref<6xf32, #tpu.memory_space<smem>>
    %c1 = arith.constant 1 : index
    %16 = memref.load %arg3[%c1] : memref<6xf32, #tpu.memory_space<smem>>
    %cst = arith.constant dense<0.000000e+00> : vector<16xf32>
    %17 = vector.multi_reduction <add>, %0, %cst [1] : vector<16x32xf32> to vector<16xf32>
    %18 = vector.shape_cast %17 : vector<16xf32> to vector<16x1xf32>
    %cst_19 = arith.constant 3.200000e+01 : f32
    %19 = vector.broadcast %cst_19 : f32 to vector<16x1xf32>
    %20 = arith.divf %18, %19 : vector<16x1xf32>
    %21 = vector.broadcast %20 : vector<16x1xf32> to vector<16x32xf32>
    %22 = arith.subf %0, %21 : vector<16x32xf32>
    %23 = arith.mulf %22, %22 : vector<16x32xf32>
    %cst_20 = arith.constant dense<0.000000e+00> : vector<16xf32>
    %24 = vector.multi_reduction <add>, %23, %cst_20 [1] : vector<16x32xf32> to vector<16xf32>
    %25 = vector.shape_cast %24 : vector<16xf32> to vector<16x1xf32>
    %cst_21 = arith.constant 0.0322580636 : f32
    %26 = vector.broadcast %cst_21 : f32 to vector<16x1xf32>
    %27 = arith.mulf %25, %26 : vector<16x1xf32>
    %28 = math.sqrt %27 : vector<16x1xf32>
    %cst_22 = arith.constant 9.99999997E-7 : f32
    %29 = vector.broadcast %cst_22 : f32 to vector<16x1xf32>
    %30 = arith.addf %28, %29 : vector<16x1xf32>
    %31 = tpu.reciprocal %30 : vector<16x1xf32> -> vector<16x1xf32>
    %32 = vector.broadcast %20 : vector<16x1xf32> to vector<16x32xf32>
    %33 = arith.subf %0, %32 : vector<16x32xf32>
    %34 = vector.broadcast %15 : f32 to vector<16x32xf32>
    %35 = arith.mulf %34, %33 : vector<16x32xf32>
    %36 = vector.broadcast %31 : vector<16x1xf32> to vector<16x32xf32>
    %37 = arith.mulf %35, %36 : vector<16x32xf32>
    %38 = vector.broadcast %16 : f32 to vector<16x32xf32>
    %39 = arith.addf %37, %38 : vector<16x32xf32>
    %40 = tpu.concatenate %39, %1 in 0 : vector<16x32xf32>, vector<16x32xf32> -> vector<32x32xf32>
    %cst_23 = arith.constant dense<0.000000e+00> : vector<32x64xf32>
    %41 = tpu.matmul %40, %5, %cst_23 {dimension_numbers = #tpu.dot_dimension_numbers<[1], [0], [0], [1], [0, 0, 1, 1], [], []>} : vector<32x32xf32>, vector<32x64xf32>, vector<32x64xf32> -> vector<32x64xf32>
    %42 = vector.broadcast %10 : vector<1x64xf32> to vector<32x64xf32>
    %43 = arith.addf %41, %42 : vector<32x64xf32>
    %44 = vector.extract_strided_slice %43 {offsets = [0, 0], sizes = [16, 64], strides = [1, 1]} : vector<32x64xf32> to vector<16x64xf32>
    %cst_24 = arith.constant dense<0.000000e+00> : vector<16x32xf32>
    %45 = tpu.matmul %39, %4, %cst_24 {dimension_numbers = #tpu.dot_dimension_numbers<[1], [0], [0], [1], [0, 0, 1, 1], [], []>} : vector<16x32xf32>, vector<32x32xf32>, vector<16x32xf32> -> vector<16x32xf32>
    %46 = vector.broadcast %9 : vector<1x32xf32> to vector<16x32xf32>
    %47 = arith.addf %45, %46 : vector<16x32xf32>
    %48 = vector.extract_strided_slice %14 {offsets = [0, 0], sizes = [1, 32], strides = [1, 1]} : vector<4x32xf32> to vector<1x32xf32>
    %49 = vector.broadcast %48 : vector<1x32xf32> to vector<16x32xf32>
    %50 = arith.mulf %47, %49 : vector<16x32xf32>
    %51 = vector.extract_strided_slice %14 {offsets = [1, 0], sizes = [1, 32], strides = [1, 1]} : vector<4x32xf32> to vector<1x32xf32>
    %52 = vector.broadcast %51 : vector<1x32xf32> to vector<16x32xf32>
    %53 = arith.mulf %47, %52 : vector<16x32xf32>
    %54 = vector.extract_strided_slice %14 {offsets = [2, 0], sizes = [1, 32], strides = [1, 1]} : vector<4x32xf32> to vector<1x32xf32>
    %55 = vector.broadcast %54 : vector<1x32xf32> to vector<16x32xf32>
    %56 = arith.mulf %47, %55 : vector<16x32xf32>
    %57 = vector.extract_strided_slice %14 {offsets = [3, 0], sizes = [1, 32], strides = [1, 1]} : vector<4x32xf32> to vector<1x32xf32>
    %58 = vector.broadcast %57 : vector<1x32xf32> to vector<16x32xf32>
    %59 = arith.mulf %47, %58 : vector<16x32xf32>
    %60 = tpu.concatenate %50, %53, %56, %59 in 0 : vector<16x32xf32>, vector<16x32xf32>, vector<16x32xf32>, vector<16x32xf32> -> vector<64x32xf32>
    %61 = vector.extract_strided_slice %44 {offsets = [0, 0], sizes = [16, 32], strides = [1, 1]} : vector<16x64xf32> to vector<16x32xf32>
    %62 = vector.extract_strided_slice %44 {offsets = [0, 32], sizes = [16, 32], strides = [1, 1]} : vector<16x64xf32> to vector<16x32xf32>
    %cst_25 = arith.constant dense<0.000000e+00> : vector<64x16xf32>
    %63 = tpu.matmul %60, %61, %cst_25 {dimension_numbers = #tpu.dot_dimension_numbers<[1], [1], [0], [0], [0, 0, 1, 0], [], []>} : vector<64x32xf32>, vector<16x32xf32>, vector<64x16xf32> -> vector<64x16xf32>
    %cst_26 = arith.constant 0.353553385 : f32
    %64 = vector.broadcast %cst_26 : f32 to vector<64x16xf32>
    %65 = arith.mulf %63, %64 : vector<64x16xf32>
    %66 = arith.addf %65, %2 : vector<64x16xf32>
    %cst_27 = arith.constant dense<0xFF800000> : vector<64xf32>
    %67 = vector.multi_reduction <maximumf>, %66, %cst_27 [1] : vector<64x16xf32> to vector<64xf32>
    %68 = vector.shape_cast %67 : vector<64xf32> to vector<64x1xf32>
    %69 = vector.broadcast %68 : vector<64x1xf32> to vector<64x16xf32>
    %70 = arith.subf %66, %69 : vector<64x16xf32>
    %71 = math.exp %70 : vector<64x16xf32>
    %cst_28 = arith.constant dense<0.000000e+00> : vector<64xf32>
    %72 = vector.multi_reduction <add>, %71, %cst_28 [1] : vector<64x16xf32> to vector<64xf32>
    %73 = vector.shape_cast %72 : vector<64xf32> to vector<64x1xf32>
    %74 = tpu.reciprocal %73 {approx = true} : vector<64x1xf32> -> vector<64x1xf32>
    %75 = vector.broadcast %74 : vector<64x1xf32> to vector<64x16xf32>
    %76 = arith.mulf %71, %75 : vector<64x16xf32>
    %cst_29 = arith.constant dense<0.000000e+00> : vector<64x32xf32>
    %77 = tpu.matmul %76, %62, %cst_29 {dimension_numbers = #tpu.dot_dimension_numbers<[1], [0], [0], [1], [0, 0, 1, 1], [], []>} : vector<64x16xf32>, vector<16x32xf32>, vector<64x32xf32> -> vector<64x32xf32>
    %78 = vector.extract_strided_slice %77 {offsets = [0, 0], sizes = [16, 32], strides = [1, 1]} : vector<64x32xf32> to vector<16x32xf32>
    %79 = vector.extract_strided_slice %14 {offsets = [0, 0], sizes = [1, 32], strides = [1, 1]} : vector<4x32xf32> to vector<1x32xf32>
    %80 = vector.broadcast %79 : vector<1x32xf32> to vector<16x32xf32>
    %81 = arith.mulf %78, %80 : vector<16x32xf32>
    %82 = vector.extract_strided_slice %77 {offsets = [16, 0], sizes = [16, 32], strides = [1, 1]} : vector<64x32xf32> to vector<16x32xf32>
    %83 = vector.extract_strided_slice %14 {offsets = [1, 0], sizes = [1, 32], strides = [1, 1]} : vector<4x32xf32> to vector<1x32xf32>
    %84 = vector.broadcast %83 : vector<1x32xf32> to vector<16x32xf32>
    %85 = arith.mulf %82, %84 : vector<16x32xf32>
    %86 = arith.addf %81, %85 : vector<16x32xf32>
    %87 = vector.extract_strided_slice %77 {offsets = [32, 0], sizes = [16, 32], strides = [1, 1]} : vector<64x32xf32> to vector<16x32xf32>
    %88 = vector.extract_strided_slice %14 {offsets = [2, 0], sizes = [1, 32], strides = [1, 1]} : vector<4x32xf32> to vector<1x32xf32>
    %89 = vector.broadcast %88 : vector<1x32xf32> to vector<16x32xf32>
    %90 = arith.mulf %87, %89 : vector<16x32xf32>
    %91 = arith.addf %86, %90 : vector<16x32xf32>
    %92 = vector.extract_strided_slice %77 {offsets = [48, 0], sizes = [16, 32], strides = [1, 1]} : vector<64x32xf32> to vector<16x32xf32>
    %93 = vector.extract_strided_slice %14 {offsets = [3, 0], sizes = [1, 32], strides = [1, 1]} : vector<4x32xf32> to vector<1x32xf32>
    %94 = vector.broadcast %93 : vector<1x32xf32> to vector<16x32xf32>
    %95 = arith.mulf %92, %94 : vector<16x32xf32>
    %96 = arith.addf %91, %95 : vector<16x32xf32>
    %cst_30 = arith.constant dense<0.000000e+00> : vector<16x32xf32>
    %97 = tpu.matmul %96, %6, %cst_30 {dimension_numbers = #tpu.dot_dimension_numbers<[1], [0], [0], [1], [0, 0, 1, 1], [], []>} : vector<16x32xf32>, vector<32x32xf32>, vector<16x32xf32> -> vector<16x32xf32>
    %98 = vector.broadcast %11 : vector<1x32xf32> to vector<16x32xf32>
    %99 = arith.addf %97, %98 : vector<16x32xf32>
    %100 = arith.addf %0, %99 : vector<16x32xf32>
    %c2 = arith.constant 2 : index
    %101 = memref.load %arg3[%c2] : memref<6xf32, #tpu.memory_space<smem>>
    %c3 = arith.constant 3 : index
    %102 = memref.load %arg3[%c3] : memref<6xf32, #tpu.memory_space<smem>>
    %cst_31 = arith.constant dense<0.000000e+00> : vector<16xf32>
    %103 = vector.multi_reduction <add>, %100, %cst_31 [1] : vector<16x32xf32> to vector<16xf32>
    %104 = vector.shape_cast %103 : vector<16xf32> to vector<16x1xf32>
    %cst_32 = arith.constant 3.200000e+01 : f32
    %105 = vector.broadcast %cst_32 : f32 to vector<16x1xf32>
    %106 = arith.divf %104, %105 : vector<16x1xf32>
    %107 = vector.broadcast %106 : vector<16x1xf32> to vector<16x32xf32>
    %108 = arith.subf %100, %107 : vector<16x32xf32>
    %109 = arith.mulf %108, %108 : vector<16x32xf32>
    %cst_33 = arith.constant dense<0.000000e+00> : vector<16xf32>
    %110 = vector.multi_reduction <add>, %109, %cst_33 [1] : vector<16x32xf32> to vector<16xf32>
    %111 = vector.shape_cast %110 : vector<16xf32> to vector<16x1xf32>
    %cst_34 = arith.constant 0.0322580636 : f32
    %112 = vector.broadcast %cst_34 : f32 to vector<16x1xf32>
    %113 = arith.mulf %111, %112 : vector<16x1xf32>
    %114 = math.sqrt %113 : vector<16x1xf32>
    %cst_35 = arith.constant 9.99999997E-7 : f32
    %115 = vector.broadcast %cst_35 : f32 to vector<16x1xf32>
    %116 = arith.addf %114, %115 : vector<16x1xf32>
    %117 = tpu.reciprocal %116 : vector<16x1xf32> -> vector<16x1xf32>
    %118 = vector.broadcast %106 : vector<16x1xf32> to vector<16x32xf32>
    %119 = arith.subf %100, %118 : vector<16x32xf32>
    %120 = vector.broadcast %101 : f32 to vector<16x32xf32>
    %121 = arith.mulf %120, %119 : vector<16x32xf32>
    %122 = vector.broadcast %117 : vector<16x1xf32> to vector<16x32xf32>
    %123 = arith.mulf %121, %122 : vector<16x32xf32>
    %124 = vector.broadcast %102 : f32 to vector<16x32xf32>
    %125 = arith.addf %123, %124 : vector<16x32xf32>
    %126 = vector.extract_strided_slice %43 {offsets = [16, 0], sizes = [16, 64], strides = [1, 1]} : vector<32x64xf32> to vector<16x64xf32>
    %cst_36 = arith.constant dense<0.000000e+00> : vector<16x32xf32>
    %127 = tpu.matmul %125, %4, %cst_36 {dimension_numbers = #tpu.dot_dimension_numbers<[1], [0], [0], [1], [0, 0, 1, 1], [], []>} : vector<16x32xf32>, vector<32x32xf32>, vector<16x32xf32> -> vector<16x32xf32>
    %128 = vector.broadcast %9 : vector<1x32xf32> to vector<16x32xf32>
    %129 = arith.addf %127, %128 : vector<16x32xf32>
    %130 = vector.extract_strided_slice %14 {offsets = [0, 0], sizes = [1, 32], strides = [1, 1]} : vector<4x32xf32> to vector<1x32xf32>
    %131 = vector.broadcast %130 : vector<1x32xf32> to vector<16x32xf32>
    %132 = arith.mulf %129, %131 : vector<16x32xf32>
    %133 = vector.extract_strided_slice %14 {offsets = [1, 0], sizes = [1, 32], strides = [1, 1]} : vector<4x32xf32> to vector<1x32xf32>
    %134 = vector.broadcast %133 : vector<1x32xf32> to vector<16x32xf32>
    %135 = arith.mulf %129, %134 : vector<16x32xf32>
    %136 = vector.extract_strided_slice %14 {offsets = [2, 0], sizes = [1, 32], strides = [1, 1]} : vector<4x32xf32> to vector<1x32xf32>
    %137 = vector.broadcast %136 : vector<1x32xf32> to vector<16x32xf32>
    %138 = arith.mulf %129, %137 : vector<16x32xf32>
    %139 = vector.extract_strided_slice %14 {offsets = [3, 0], sizes = [1, 32], strides = [1, 1]} : vector<4x32xf32> to vector<1x32xf32>
    %140 = vector.broadcast %139 : vector<1x32xf32> to vector<16x32xf32>
    %141 = arith.mulf %129, %140 : vector<16x32xf32>
    %142 = tpu.concatenate %132, %135, %138, %141 in 0 : vector<16x32xf32>, vector<16x32xf32>, vector<16x32xf32>, vector<16x32xf32> -> vector<64x32xf32>
    %143 = vector.extract_strided_slice %126 {offsets = [0, 0], sizes = [16, 32], strides = [1, 1]} : vector<16x64xf32> to vector<16x32xf32>
    %144 = vector.extract_strided_slice %126 {offsets = [0, 32], sizes = [16, 32], strides = [1, 1]} : vector<16x64xf32> to vector<16x32xf32>
    %cst_37 = arith.constant dense<0.000000e+00> : vector<64x16xf32>
    %145 = tpu.matmul %142, %143, %cst_37 {dimension_numbers = #tpu.dot_dimension_numbers<[1], [1], [0], [0], [0, 0, 1, 0], [], []>} : vector<64x32xf32>, vector<16x32xf32>, vector<64x16xf32> -> vector<64x16xf32>
    %cst_38 = arith.constant 0.353553385 : f32
    %146 = vector.broadcast %cst_38 : f32 to vector<64x16xf32>
    %147 = arith.mulf %145, %146 : vector<64x16xf32>
    %148 = arith.addf %147, %3 : vector<64x16xf32>
    %cst_39 = arith.constant dense<0xFF800000> : vector<64xf32>
    %149 = vector.multi_reduction <maximumf>, %148, %cst_39 [1] : vector<64x16xf32> to vector<64xf32>
    %150 = vector.shape_cast %149 : vector<64xf32> to vector<64x1xf32>
    %151 = vector.broadcast %150 : vector<64x1xf32> to vector<64x16xf32>
    %152 = arith.subf %148, %151 : vector<64x16xf32>
    %153 = math.exp %152 : vector<64x16xf32>
    %cst_40 = arith.constant dense<0.000000e+00> : vector<64xf32>
    %154 = vector.multi_reduction <add>, %153, %cst_40 [1] : vector<64x16xf32> to vector<64xf32>
    %155 = vector.shape_cast %154 : vector<64xf32> to vector<64x1xf32>
    %156 = tpu.reciprocal %155 {approx = true} : vector<64x1xf32> -> vector<64x1xf32>
    %157 = vector.broadcast %156 : vector<64x1xf32> to vector<64x16xf32>
    %158 = arith.mulf %153, %157 : vector<64x16xf32>
    %cst_41 = arith.constant dense<0.000000e+00> : vector<64x32xf32>
    %159 = tpu.matmul %158, %144, %cst_41 {dimension_numbers = #tpu.dot_dimension_numbers<[1], [0], [0], [1], [0, 0, 1, 1], [], []>} : vector<64x16xf32>, vector<16x32xf32>, vector<64x32xf32> -> vector<64x32xf32>
    %160 = vector.extract_strided_slice %159 {offsets = [0, 0], sizes = [16, 32], strides = [1, 1]} : vector<64x32xf32> to vector<16x32xf32>
    %161 = vector.extract_strided_slice %14 {offsets = [0, 0], sizes = [1, 32], strides = [1, 1]} : vector<4x32xf32> to vector<1x32xf32>
    %162 = vector.broadcast %161 : vector<1x32xf32> to vector<16x32xf32>
    %163 = arith.mulf %160, %162 : vector<16x32xf32>
    %164 = vector.extract_strided_slice %159 {offsets = [16, 0], sizes = [16, 32], strides = [1, 1]} : vector<64x32xf32> to vector<16x32xf32>
    %165 = vector.extract_strided_slice %14 {offsets = [1, 0], sizes = [1, 32], strides = [1, 1]} : vector<4x32xf32> to vector<1x32xf32>
    %166 = vector.broadcast %165 : vector<1x32xf32> to vector<16x32xf32>
    %167 = arith.mulf %164, %166 : vector<16x32xf32>
    %168 = arith.addf %163, %167 : vector<16x32xf32>
    %169 = vector.extract_strided_slice %159 {offsets = [32, 0], sizes = [16, 32], strides = [1, 1]} : vector<64x32xf32> to vector<16x32xf32>
    %170 = vector.extract_strided_slice %14 {offsets = [2, 0], sizes = [1, 32], strides = [1, 1]} : vector<4x32xf32> to vector<1x32xf32>
    %171 = vector.broadcast %170 : vector<1x32xf32> to vector<16x32xf32>
    %172 = arith.mulf %169, %171 : vector<16x32xf32>
    %173 = arith.addf %168, %172 : vector<16x32xf32>
    %174 = vector.extract_strided_slice %159 {offsets = [48, 0], sizes = [16, 32], strides = [1, 1]} : vector<64x32xf32> to vector<16x32xf32>
    %175 = vector.extract_strided_slice %14 {offsets = [3, 0], sizes = [1, 32], strides = [1, 1]} : vector<4x32xf32> to vector<1x32xf32>
    %176 = vector.broadcast %175 : vector<1x32xf32> to vector<16x32xf32>
    %177 = arith.mulf %174, %176 : vector<16x32xf32>
    %178 = arith.addf %173, %177 : vector<16x32xf32>
    %cst_42 = arith.constant dense<0.000000e+00> : vector<16x32xf32>
    %179 = tpu.matmul %178, %6, %cst_42 {dimension_numbers = #tpu.dot_dimension_numbers<[1], [0], [0], [1], [0, 0, 1, 1], [], []>} : vector<16x32xf32>, vector<32x32xf32>, vector<16x32xf32> -> vector<16x32xf32>
    %180 = vector.broadcast %11 : vector<1x32xf32> to vector<16x32xf32>
    %181 = arith.addf %179, %180 : vector<16x32xf32>
    %182 = arith.addf %100, %181 : vector<16x32xf32>
    %c4 = arith.constant 4 : index
    %183 = memref.load %arg3[%c4] : memref<6xf32, #tpu.memory_space<smem>>
    %c5 = arith.constant 5 : index
    %184 = memref.load %arg3[%c5] : memref<6xf32, #tpu.memory_space<smem>>
    %cst_43 = arith.constant dense<0.000000e+00> : vector<16xf32>
    %185 = vector.multi_reduction <add>, %182, %cst_43 [1] : vector<16x32xf32> to vector<16xf32>
    %186 = vector.shape_cast %185 : vector<16xf32> to vector<16x1xf32>
    %cst_44 = arith.constant 3.200000e+01 : f32
    %187 = vector.broadcast %cst_44 : f32 to vector<16x1xf32>
    %188 = arith.divf %186, %187 : vector<16x1xf32>
    %189 = vector.broadcast %188 : vector<16x1xf32> to vector<16x32xf32>
    %190 = arith.subf %182, %189 : vector<16x32xf32>
    %191 = arith.mulf %190, %190 : vector<16x32xf32>
    %cst_45 = arith.constant dense<0.000000e+00> : vector<16xf32>
    %192 = vector.multi_reduction <add>, %191, %cst_45 [1] : vector<16x32xf32> to vector<16xf32>
    %193 = vector.shape_cast %192 : vector<16xf32> to vector<16x1xf32>
    %cst_46 = arith.constant 0.0322580636 : f32
    %194 = vector.broadcast %cst_46 : f32 to vector<16x1xf32>
    %195 = arith.mulf %193, %194 : vector<16x1xf32>
    %196 = math.sqrt %195 : vector<16x1xf32>
    %cst_47 = arith.constant 9.99999997E-7 : f32
    %197 = vector.broadcast %cst_47 : f32 to vector<16x1xf32>
    %198 = arith.addf %196, %197 : vector<16x1xf32>
    %199 = tpu.reciprocal %198 : vector<16x1xf32> -> vector<16x1xf32>
    %200 = vector.broadcast %188 : vector<16x1xf32> to vector<16x32xf32>
    %201 = arith.subf %182, %200 : vector<16x32xf32>
    %202 = vector.broadcast %183 : f32 to vector<16x32xf32>
    %203 = arith.mulf %202, %201 : vector<16x32xf32>
    %204 = vector.broadcast %199 : vector<16x1xf32> to vector<16x32xf32>
    %205 = arith.mulf %203, %204 : vector<16x32xf32>
    %206 = vector.broadcast %184 : f32 to vector<16x32xf32>
    %207 = arith.addf %205, %206 : vector<16x32xf32>
    %cst_48 = arith.constant dense<0.000000e+00> : vector<16x64xf32>
    %208 = tpu.matmul %207, %7, %cst_48 {dimension_numbers = #tpu.dot_dimension_numbers<[1], [0], [0], [1], [0, 0, 1, 1], [], []>} : vector<16x32xf32>, vector<32x64xf32>, vector<16x64xf32> -> vector<16x64xf32>
    %209 = vector.broadcast %12 : vector<1x64xf32> to vector<16x64xf32>
    %210 = arith.addf %208, %209 : vector<16x64xf32>
    %cst_49 = arith.constant 0.000000e+00 : f32
    %211 = vector.broadcast %cst_49 : f32 to vector<16x64xf32>
    %212 = arith.maximumf %210, %211 : vector<16x64xf32>
    %cst_50 = arith.constant dense<0.000000e+00> : vector<16x32xf32>
    %213 = tpu.matmul %212, %8, %cst_50 {dimension_numbers = #tpu.dot_dimension_numbers<[1], [0], [0], [1], [0, 0, 1, 1], [], []>} : vector<16x64xf32>, vector<64x32xf32>, vector<16x32xf32> -> vector<16x32xf32>
    %214 = vector.broadcast %13 : vector<1x32xf32> to vector<16x32xf32>
    %215 = arith.addf %213, %214 : vector<16x32xf32>
    %216 = arith.addf %182, %215 : vector<16x32xf32>
    %c0_51 = arith.constant 0 : index
    %c0_52 = arith.constant 0 : index
    %217 = vector.load %arg4[%c0_51, %c0_52] : memref<16x32xf32, #tpu.memory_space<vmem>>, vector<16x32xf32>
    tpu.vector_store %arg4[%c0_51, %c0_52], %216 {strides = array<i32>} : memref<16x32xf32, #tpu.memory_space<vmem>>, vector<16x32xf32>,
    return
  }
}

</mosaic_0001>

<bundles_post_ra>
// kernel: forward.1
= control target key start
LH: loop header
LB: loop body
LE: loop exit
PB: predicated region body
PF: predicated region fallthrough
CT: control target
= control target key end

     0   :  { %9 = vsyncpa [#allocation3], 0  ;;  %s2477_s0 = inlined_call_operand.vmem [shape: f32[32,32], index: 0, kind: input, shape index: {}]   ;;  %s2478_s1 = inlined_call_operand.hbm [shape: f32[128,16], index: 1, kind: input, shape index: {}]   ;;  %s2479_s2 = inlined_call_operand.hbm [shape: f32[240,64], index: 2, kind: input, shape index: {}]   ;;  %s2480_s3 = inlined_call_operand.vmem [shape: f32[6], index: 3, kind: input, shape index: {}]   ;;  %s2481_s4 = inlined_call_operand.hbm [shape: f32[16,32], index: 4, kind: output, shape index: {}]  }
   0x1   :  { %10 = vsyncpa [#allocation7], 0 }
   0x2   :  { %11 = vsyncpa [#allocation5], 0 }
   0x3   :  { %12 = vsyncpa [#allocation4], 0  ;;  %s2168_s15 = smov [#allocation2]  }
   0x4   :  { %s20_s16 = sshll.u32 %s2168_s15, 4  ;;  %s21_s16 = int_to_ptr.vmem [resolvable:$true] %s20_s16 }
   0x5   :  { %s2096_s17 = scalar_lea.vmem %s21_s16, 2048  ;;  %p2101_p1 = scmp.lt.s32.totalorder %s21_s16, %s21_s16 }
   0x6   :  { %p2097_p0 = scmp.ne.s32.totalorder %s21_s16, %s2096_s17  ;;  %p2102_p2 = scmp.lt.s32.totalorder %s2096_s17, %s2096_s17 }
   0x8   :  { %p2103_p3 = por %p2102_p2, %p2101_p1 }
   0xa   :  { %p2104_p4 = pnand %p2103_p3, %p2097_p0 }
   0xc   :  { %2107 = shalt.err (!%p2104_p4)
}
   0xd   :  { %s2169_s18 = smov 128   ;;  %s2170_s19 = smov 8  }
   0xe   :  { %26 = dma.hbm_to_vmem [thread:$0]  %s2478_s1, 2048, %s21_s16, [#allocation3], %s2169_s18, %s2169_s18, %s2170_s19  }
   0xf   :  { %s2171_s22 = smov [#allocation6]   ;;  %s45_s26 = sshll.u32 %s2480_s3, 4  ;;  %s46_s26 = int_to_ptr.vmem [resolvable:$true] %s45_s26 }
  0x10   :  { %s32_s23 = sshll.u32 %s2171_s22, 4  ;;  %s33_s23 = int_to_ptr.vmem [resolvable:$true] %s32_s23 }
  0x11   :  { %s2116_s27 = scalar_lea.vmem %s33_s23, 3840  ;;  %p2121_p6 = scmp.lt.s32.totalorder %s33_s23, %s33_s23 }
  0x12   :  { %p2117_p5 = scmp.ne.s32.totalorder %s33_s23, %s2116_s27  ;;  %p2122_p7 = scmp.lt.s32.totalorder %s2116_s27, %s2116_s27 }
  0x14   :  { %p2123_p8 = por %p2122_p7, %p2121_p6 }
  0x16   :  { %p2124_p9 = pnand %p2123_p8, %p2117_p5 }
  0x18   :  { %2127 = shalt.err (!%p2124_p9)
}
  0x19   :  { %38 = dma.hbm_to_vmem [thread:$0]  %s2479_s2, 3840, %s33_s23, [#allocation7], %s2169_s18, %s2169_s18, %s2170_s19  }
  0x1a   :  { %s2128_s29 = scalar_lea.vmem %s46_s26, 16  ;;  %p2133_p11 = scmp.lt.s32.totalorder %s46_s26, %s46_s26 }
  0x1b   :  { %p2129_p10 = scmp.ne.s32.totalorder %s46_s26, %s2128_s29  ;;  %p2134_p12 = scmp.lt.s32.totalorder %s2128_s29, %s2128_s29 }
  0x1d   :  { %p2135_p13 = por %p2134_p12, %p2133_p11 }
  0x1f   :  { %p2136_p0 = pnand %p2135_p13, %p2129_p10 }
  0x21   :  { %2139 = shalt.err (!%p2136_p0)
}
  0x22   :  { %s2172_s3 = smov [#allocation8]  }
  0x23   :  { %48 = dma.vmem_to_smem %s46_s26, 16, %s2172_s3, [#allocation5]  }
  0x24   :  { %2160 = dma.done.wait [#allocation3], 2048  }
  0x25   :  { %2161 = vsyncadd [#allocation3], 4294965248 }
  0x26   :  { %2162 = dma.done.wait [#allocation7], 3840  }
  0x27   :  { %2163 = vsyncadd [#allocation7], 4294963456 }
  0x28   :  { %2164 = dma.done.wait [#allocation5], 16  }
  0x29   :  { %2165 = vsyncadd [#allocation5], 4294967280 }
  0x2a   :  { %58 = sfence }
  0x2b   :  { %v2218_v0 = vld [vmem:[%s2477_s0] sm:$0xff]  ;;  %vm111_vm0 = vcmask 261120   ;;  %v2223_v1 = vld [vmem:[%s2477_s0 + $0x8] sm:$0xff]  ;;  %v86_v14 = vld [vmem:[#allocation6 + $0x38] sm:$0xff]  ;;  %s109_s7 = sld [smem:[#allocation8]]  ;;  %v339_v51 = vlaneseq  ;;  %vm514_vm5 = vcmask 130048  }
  0x2c   :  { %v112_v2 = vsel %vm111_vm0, %v2218_v0, 0.0  ;;  %v115_v3 = vsel %vm111_vm0, %v2223_v1, 0.0  ;;  %v85_v15 = vld [vmem:[#allocation6 + $0x30] sm:$0xff]  ;;  %1841 = vmatprep.subr.mxu1 %v86_v14  ;;  %v84_v16 = vld [vmem:[#allocation6 + $0x28] sm:$0xff]  ;;  %v83_v17 = vld [vmem:[#allocation6 + $0x20] sm:$0xff]  ;;  %s1691_s8 = sld [smem:[#allocation8 + $0x1]] }
  0x2d   :  { %113 = vadd.xlane.f32.xlu0 %v112_v2  ;;  %1842 = vmatpush3.msra.mxu1 %v86_v14  ;;  %v2233_v18 = vld [vmem:[#allocation6 + $0x18] sm:$0xff]  ;;  %v61_v45 = vld [vmem:[%s2477_s0 + $0x10] sm:$0xff]  ;;  %v80_v48 = vld [vmem:[#allocation6 + $0x8] sm:$0xff]  ;;  %v340_v55 = vshrl.u32 %v339_v51, 7  ;;  %s1721_s13 = sld [smem:[#allocation8 + $0x2]]  ;;  %vm1586_vm14 = vcmask 523264  }
  0x2e   :  { %1843 = vmatprep.subr.mxu1 %v85_v15  ;;  %v81_v46 = vld [vmem:[#allocation6 + $0x10] sm:$0xff]  ;;  %v62_v47 = vld [vmem:[%s2477_s0 + $0x18] sm:$0xff]  ;;  %v79_v49 = vld [vmem:[#allocation6] sm:$0xff]  ;;  %s2173_s0 = smov 96   ;;  %s1722_s14 = sld [smem:[#allocation8 + $0x3]] }
  0x2f   :  { %1844 = vmatpush3.msra.mxu1 %v85_v15  ;;  %v1692_v50 = vld [vmem:[#allocation6 + $0xc8] ss:$0 sm:$0xff]  ;;  %v341_v60 = vsub.s32 0, %v340_v55  ;;  %v2263_v62 = vld [vmem:[#allocation6 + $0xc0] ss:$0 sm:$0xff]  ;;  %v359_v14 = vsub.s32 3, %v340_v55 }
  0x30   :  { %1845 = vmatprep.subr.mxu1 %v84_v16  ;;  %v108_v63 = vld [vmem:[#allocation6 + $0xe8] sm:$0xf]  ;;  %s1745_s15 = sld [smem:[#allocation8 + $0x4]]  ;;  %s2174_s17 = smov [#allocation9]  }
  0x31   :  { %116 = vadd.xlane.f32.xlu0 %v115_v3  ;;  %1846 = vmatpush3.msra.mxu1 %v84_v16  ;;  %v151_v35 = vstv %s109_s7  ;;  %v347_v3 = vsub.s32 1, %v340_v55  ;;  %s1746_s16 = sld [smem:[#allocation8 + $0x5]]  ;;  %s1677_s20 = sshll.u32 %s2174_s17, 4  ;;  %s1678_s20 = int_to_ptr.vmem [resolvable:$true] %s1677_s20 }
  0x32   :  { %1847 = vmatprep.subr.mxu1 %v83_v17  ;;  %v156_v38 = vstv %s1691_s8  ;;  %s2140_s21 = scalar_lea.vmem %s1678_s20, 256  ;;  %p2145_p2 = scmp.lt.s32.totalorder %s1678_s20, %s1678_s20 }
  0x33   :  { %1848 = vmatpush3.msra.mxu1 %v83_v17  ;;  %v2287_v17 = vrot.slane %v108_v63, %v359_v14  ;;  %p2141_p1 = scmp.ne.s32.totalorder %s1678_s20, %s2140_s21  ;;  %p2146_p3 = scmp.lt.s32.totalorder %s2140_s21, %s2140_s21 }
  0x34   :  { %1855 = vmatprep.subr.mxu1 %v2233_v18 }
  0x35   :  { %p2147_p4 = por %p2146_p3, %p2145_p2 }
  0x37   :  { %p2148_p5 = pnand %p2147_p4, %p2141_p1 }
  0xb6   :  { %v114_v4 = vpop.xlane.xlu0 %113 }
  0xb7   :  { %v119_v5 = vmul.f32 0.03125, %v114_v4 }
  0xb9   :  { %v121_v6 = vsub.f32 %v2218_v0, %v119_v5 }
  0xba   :  { %v117_v7 = vpop.xlane.xlu0 %116 }
  0xbb   :  { %v120_v8 = vmul.f32 0.03125, %v117_v7  ;;  %v123_v9 = vmul.f32 %v121_v6, %v121_v6  ;;  %v152_v36 = vmul.f32 %v151_v35, %v121_v6  ;;  %v2269_v6 = vrot.slane %v108_v63, %v341_v60 }
  0xbd   :  { %v122_v10 = vsub.f32 %v2223_v1, %v120_v8  ;;  %v125_v11 = vsel %vm111_vm0, %v123_v9, 0.0  ;;  %v2273_v9 = vrot.slane %v108_v63, %v347_v3 }
  0xbe   :  { %126 = vadd.xlane.f32.xlu1 %v125_v11 }
  0xbf   :  { %v124_v12 = vmul.f32 %v122_v10, %v122_v10  ;;  %v153_v40 = vmul.f32 %v151_v35, %v122_v10  ;;  %v353_v10 = vsub.s32 2, %v340_v55  ;;  %v69_v55 = vld [vmem:[#allocation2 + $0x30] sm:$0xff] }
  0xc1   :  { %v128_v13 = vsel %vm111_vm0, %v124_v12, 0.0 }
  0xc2   :  { %129 = vadd.xlane.f32.xlu1 %v128_v13  ;;  %v2280_v13 = vrot.slane %v108_v63, %v353_v10 }
 0x147   :  { %v127_v19 = vpop.xlane.xlu1 %126 }
 0x148   :  { %v131_v20 = vmul.f32 0.032258064, %v127_v19 }
 0x14a   :  { %2000 = vrsqrt.f32 %v131_v20  ;;  %vm135_vm1 = vcmp.eq.f32.partialorder %v131_v20, inf  ;;  %v138_v25 = vand.u32 2147483648, %v131_v20  ;;  %vm137_vm2 = vcmp.eq.f32.partialorder %v131_v20, 0.0 }
 0x14b   :  { %v130_v21 = vpop.xlane.xlu1 %129 }
 0x14c   :  { %v132_v22 = vmul.f32 0.032258064, %v130_v21 }
 0x14e   :  { %2002 = vrsqrt.f32 %v132_v22  ;;  %vm142_vm3 = vcmp.eq.f32.partialorder %v132_v22, inf  ;;  %v145_v31 = vand.u32 2147483648, %v132_v22  ;;  %vm144_vm4 = vcmp.eq.f32.partialorder %v132_v22, 0.0 }
 0x157   :  { %v2001_v23 = vpop.eup %2000 }
 0x158   :  { %v134_v24 = vmul.f32 %v2001_v23, %v131_v20 }
 0x15a   :  { %v136_v26 = vsel %vm135_vm1, %v131_v20, %v134_v24 }
 0x15b   :  { %v2003_v27 = vpop.eup %2002  ;;  %v139_v28 = vsel %vm137_vm2, %v138_v25, %v136_v26  ;;  %v63_v25 = vld [vmem:[#allocation2] sm:$0xff] }
 0x15c   :  { %v141_v29 = vmul.f32 %v2003_v27, %v132_v22  ;;  %v147_v30 = vadd.f32 1e-06, %v139_v28 }
 0x15e   :  { %v143_v32 = vsel %vm142_vm3, %v132_v22, %v141_v29  ;;  %2004 = vrcp.f32 %v147_v30  ;;  %v64_v22 = vld [vmem:[#allocation2 + $0x8] sm:$0xff]  ;;  %v66_v29 = vld [vmem:[#allocation2 + $0x18] sm:$0xff] }
 0x15f   :  { %v146_v33 = vsel %vm144_vm4, %v145_v31, %v143_v32 }
 0x160   :  { %v148_v34 = vadd.f32 1e-06, %v146_v33 }
 0x162   :  { %2006 = vrcp.f32 %v148_v34  ;;  %v65_v34 = vld [vmem:[#allocation2 + $0x10] sm:$0xff] }
 0x16b   :  { %v2005_v37 = vpop.eup %2004 }
 0x16c   :  { %v154_v39 = vmul.f32 %v2005_v37, %v152_v36 }
 0x16e   :  { %v157_v41 = vadd.f32 %v156_v38, %v154_v39  ;;  %v68_v39 = vld [vmem:[#allocation2 + $0x28] sm:$0xff] }
 0x16f   :  { %v2007_v42 = vpop.eup %2006 }
 0x170   :  { %v155_v43 = vmul.f32 %v2007_v42, %v153_v40  ;;  %1849 = vmatprep.mubr.msk.f32.mxu1 %vm111_vm0, %v157_v41 }
 0x172   :  { %v158_v44 = vadd.f32 %v156_v38, %v155_v43 }
 0x174   :  { %1850 = vmatmul.mubr.msk.f32.vlgmr.msra.gmra.mxu1 %vm111_vm0, %v158_v44 }
 0x175   :  { %1856 = vmatpush3.msra.mxu1 %v2233_v18  ;;  %1852 = vmatprep.mubr.msk.f32.mxu1 %vm111_vm0, %v61_v45 }
 0x176   :  { %1857 = vmatprep.subr.mxu1 %v81_v46 }
 0x177   :  { %1858 = vmatpush3.msra.mxu1 %v81_v46 }
 0x178   :  { %1853 = vmatmul.mubr.msk.f32.gmra.mxu1 %vm111_vm0, %v62_v47  ;;  %1859 = vmatprep.subr.mxu1 %v80_v48 }
 0x179   :  { %1860 = vmatpush3.msra.mxu1 %v80_v48  ;;  %1863 = vmatprep.mubr.msk.f32.mxu1 %vm111_vm0, %v157_v41 }
 0x17a   :  { %1861 = vmatprep.subr.mxu1 %v79_v49 }
 0x17b   :  { %1862 = vmatpush3.msra.mxu1 %v79_v49 }
 0x17c   :  { %1864 = vmatmul.mubr.msk.f32.vlgmr.msra.gmra.mxu1 %vm111_vm0, %v158_v44  ;;  %v67_v44 = vld [vmem:[#allocation2 + $0x20] sm:$0xff] }
 0x234   :  { %v1851_v52 = vpop.f32.mrf.mxu1 }
 0x235   :  { %v2249_v53 = vadd.f32 %v1851_v52, %v1692_v50 }
 0x236   :  { %v241_v54 = vpop.f32.mrf.mxu1 }
 0x237   :  { %v2251_v56 = vadd.f32 %v1692_v50, %v241_v54  ;;  %1866 = vmatprep.subr.msk.mxu0 %vm111_vm0, %v2249_v53 }
 0x238   :  { %v1854_v57 = vpop.f32.mrf.mxu1  ;;  %1867 = vmatpush3.xpose.msk.msra.mxu0 %vm111_vm0, %v2249_v53 }
 0x239   :  { %v2257_v58 = vadd.f32 %v1854_v57, %v1692_v50  ;;  %1868 = vmatprep.subr.msk.mxu0 %vm111_vm0, %v2251_v56 }
 0x23a   :  { %v251_v59 = vpop.f32.mrf.mxu1 }
 0x23b   :  { %v2261_v61 = vadd.f32 %v1692_v50, %v251_v59 }
 0x23c   :  { %v1865_v2 = vpop.f32.mrf.mxu1  ;;  %1869 = vmatpush3.xpose.msk.msra.mxu0 %vm111_vm0, %v2251_v56 }
 0x23d   :  { %1909 = vmatprep.subr.mxu0 %v2233_v18  ;;  %v336_v4 = vadd.f32 %v1865_v2, %v2263_v62 }
 0x23e   :  { %v330_v5 = vpop.f32.mrf.mxu1 }
 0x23f   :  { %v331_v7 = vadd.f32 %v2263_v62, %v330_v5  ;;  %v344_v11 = vmul.f32 %v2269_v6, %v336_v4  ;;  %v350_v15 = vmul.f32 %v2273_v9, %v336_v4  ;;  %v356_v19 = vmul.f32 %v2280_v13, %v336_v4 }
 0x241   :  { %v343_v8 = vmul.f32 %v2269_v6, %v331_v7  ;;  %v349_v12 = vmul.f32 %v2273_v9, %v331_v7  ;;  %v355_v16 = vmul.f32 %v2280_v13, %v331_v7  ;;  %v361_v20 = vmul.f32 %v2287_v17, %v331_v7 }
 0x243   :  { %1870 = vmatprep.mubr.msk.f32.mxu0 %vm111_vm0, %v343_v8 }
 0x244   :  { %1871 = vmatmul.mubr.msk.f32.vlgmr.msra.gmra.mxu0 %vm111_vm0, %v344_v11 }
 0x245   :  { %1873 = vmatprep.mubr.msk.f32.mxu0 %vm111_vm0, %v349_v12  ;;  %1910 = vmatpush3.msra.mxu0 %v2233_v18  ;;  %v362_v18 = vmul.f32 %v2287_v17, %v336_v4 }
 0x246   :  { %1911 = vmatprep.subr.mxu0 %v81_v46 }
 0x247   :  { %1912 = vmatpush3.msra.mxu0 %v81_v46 }
 0x248   :  { %1874 = vmatmul.mubr.msk.f32.gmra.mxu0 %vm111_vm0, %v350_v15  ;;  %1913 = vmatprep.subr.mxu0 %v80_v48 }
 0x249   :  { %1876 = vmatprep.mubr.msk.f32.mxu0 %vm111_vm0, %v355_v16  ;;  %1914 = vmatpush3.msra.mxu0 %v80_v48 }
 0x24a   :  { %1915 = vmatprep.subr.mxu0 %v79_v49 }
 0x24b   :  { %1916 = vmatpush3.msra.mxu0 %v79_v49  ;;  %v70_v49 = vld [vmem:[#allocation2 + $0x38] sm:$0xff] }
 0x24c   :  { %1877 = vmatmul.mubr.msk.f32.gmra.mxu0 %vm111_vm0, %v356_v19 }
 0x24d   :  { %1879 = vmatprep.mubr.msk.f32.mxu0 %vm111_vm0, %v361_v20 }
 0x250   :  { %1880 = vmatmul.mubr.msk.f32.gmra.mxu0 %vm111_vm0, %v362_v18 }
 0x304   :  { %v1872_v21 = vpop.f32.mrf.mxu0 }
 0x305   :  { %v499_v23 = vmul.f32 0.35355338, %v1872_v21 }
 0x306   :  { %v459_v24 = vpop.f32.mrf.mxu0 }
 0x307   :  { %v498_v26 = vmul.f32 0.35355338, %v459_v24  ;;  %v507_v27 = vadd.f32 %v499_v23, %v64_v22 }
 0x308   :  { %v1875_v28 = vpop.f32.mrf.mxu0 }
 0x309   :  { %v501_v30 = vmul.f32 0.35355338, %v1875_v28  ;;  %v518_v31 = vsel %vm514_vm5, %v507_v27, -inf  ;;  %v506_v32 = vadd.f32 %v498_v26, %v63_v25 }
 0x30a   :  { %519 = vmax.xlane.f32.xlu1 %v518_v31  ;;  %v469_v33 = vpop.f32.mrf.mxu0 }
 0x30b   :  { %v500_v35 = vmul.f32 0.35355338, %v469_v33  ;;  %v515_v36 = vsel %vm514_vm5, %v506_v32, -inf  ;;  %v509_v37 = vadd.f32 %v501_v30, %v66_v29 }
 0x30c   :  { %516 = vmax.xlane.f32.xlu0 %v515_v36  ;;  %v1878_v38 = vpop.f32.mrf.mxu0 }
 0x30d   :  { %v503_v40 = vmul.f32 0.35355338, %v1878_v38  ;;  %v524_v41 = vsel %vm514_vm5, %v509_v37, -inf  ;;  %v508_v42 = vadd.f32 %v500_v35, %v65_v34 }
 0x30e   :  { %525 = vmax.xlane.f32.xlu1 %v524_v41  ;;  %v479_v43 = vpop.f32.mrf.mxu0 }
 0x30f   :  { %v502_v45 = vmul.f32 0.35355338, %v479_v43  ;;  %v521_v46 = vsel %vm514_vm5, %v508_v42, -inf  ;;  %v511_v47 = vadd.f32 %v503_v40, %v68_v39 }
 0x310   :  { %522 = vmax.xlane.f32.xlu0 %v521_v46  ;;  %v1881_v48 = vpop.f32.mrf.mxu0 }
 0x311   :  { %v505_v50 = vmul.f32 0.35355338, %v1881_v48  ;;  %v530_v51 = vsel %vm514_vm5, %v511_v47, -inf  ;;  %v510_v52 = vadd.f32 %v502_v45, %v67_v44 }
 0x312   :  { %531 = vmax.xlane.f32.xlu1 %v530_v51  ;;  %v489_v54 = vpop.f32.mrf.mxu0 }
 0x313   :  { %v504_v57 = vmul.f32 0.35355338, %v489_v54  ;;  %v527_v59 = vsel %vm514_vm5, %v510_v52, -inf  ;;  %v513_v60 = vadd.f32 %v505_v50, %v70_v49 }
 0x314   :  { %528 = vmax.xlane.f32.xlu0 %v527_v59 }
 0x315   :  { %v536_v63 = vsel %vm514_vm5, %v513_v60, -inf  ;;  %v512_v2 = vadd.f32 %v504_v57, %v69_v55 }
 0x316   :  { %537 = vmax.xlane.f32.xlu1 %v536_v63 }
 0x317   :  { %v533_v3 = vsel %vm514_vm5, %v512_v2, -inf }
 0x318   :  { %534 = vmax.xlane.f32.xlu0 %v533_v3  ;;  %v2322_v3 = vld [vmem:[#allocation6 + $0x58] sm:$0xff] }
 0x393   :  { %v520_v4 = vpop.xlane.xlu1 %519 }
 0x394   :  { %v540_v5 = vsub.f32 %v507_v27, %v520_v4 }
 0x395   :  { %v517_v7 = vpop.xlane.xlu0 %516 }
 0x396   :  { %v549_v8 = vmul.f32 1.442695, %v540_v5  ;;  %v539_v10 = vsub.f32 %v506_v32, %v517_v7 }
 0x397   :  { %v526_v11 = vpop.xlane.xlu1 %525 }
 0x398   :  { %2008 = vpow2.f32 %v549_v8  ;;  %v547_v12 = vmul.f32 1.442695, %v539_v10  ;;  %v542_v14 = vsub.f32 %v509_v37, %v526_v11  ;;  %v2324_v8 = vld [vmem:[#allocation6 + $0x50] sm:$0xff]  ;;  %v2330_v11 = vld [vmem:[#allocation6 + $0x48] sm:$0xff] }
 0x399   :  { %v523_v15 = vpop.xlane.xlu0 %522 }
 0x39a   :  { %2010 = vpow2.f32 %v547_v12  ;;  %v553_v16 = vmul.f32 1.442695, %v542_v14  ;;  %v541_v19 = vsub.f32 %v508_v42, %v523_v15 }
 0x39b   :  { %v532_v20 = vpop.xlane.xlu1 %531 }
 0x39c   :  { %2012 = vpow2.f32 %v553_v16  ;;  %v551_v18 = vmul.f32 1.442695, %v541_v19  ;;  %v544_v21 = vsub.f32 %v511_v47, %v532_v20  ;;  %v2334_v16 = vld [vmem:[#allocation6 + $0x40] sm:$0xff] }
 0x39d   :  { %v529_v22 = vpop.xlane.xlu0 %528 }
 0x39e   :  { %2014 = vpow2.f32 %v551_v18  ;;  %v557_v23 = vmul.f32 1.442695, %v544_v21  ;;  %v543_v24 = vsub.f32 %v510_v52, %v529_v22 }
 0x39f   :  { %v538_v25 = vpop.xlane.xlu1 %537 }
 0x3a0   :  { %2016 = vpow2.f32 %v557_v23  ;;  %v555_v26 = vmul.f32 1.442695, %v543_v24  ;;  %v546_v27 = vsub.f32 %v513_v60, %v538_v25 }
 0x3a1   :  { %v535_v28 = vpop.xlane.xlu0 %534 }
 0x3a2   :  { %2018 = vpow2.f32 %v555_v26  ;;  %v561_v29 = vmul.f32 1.442695, %v546_v27  ;;  %v545_v30 = vsub.f32 %v512_v2, %v535_v28 }
 0x3a4   :  { %2020 = vpow2.f32 %v561_v29  ;;  %v559_v31 = vmul.f32 1.442695, %v545_v30 }
 0x3a5   :  { %v2009_v32 = vpop.eup %2008 }
 0x3a6   :  { %2022 = vpow2.f32 %v559_v31  ;;  %v566_v33 = vsel %vm514_vm5, %v2009_v32, 0.0 }
 0x3a7   :  { %v2011_v34 = vpop.eup %2010  ;;  %567 = vadd.xlane.f32.xlu1 %v566_v33 }
 0x3a8   :  { %v563_v35 = vsel %vm514_vm5, %v2011_v34, 0.0 }
 0x3a9   :  { %v2013_v36 = vpop.eup %2012  ;;  %564 = vadd.xlane.f32.xlu0 %v563_v35 }
 0x3aa   :  { %v572_v37 = vsel %vm514_vm5, %v2013_v36, 0.0 }
 0x3ab   :  { %v2015_v38 = vpop.eup %2014  ;;  %573 = vadd.xlane.f32.xlu1 %v572_v37 }
 0x3ac   :  { %v569_v39 = vsel %vm514_vm5, %v2015_v38, 0.0 }
 0x3ad   :  { %v2307_v40 = vpop.eup %2016  ;;  %570 = vadd.xlane.f32.xlu0 %v569_v39 }
 0x3ae   :  { %v578_v41 = vsel %vm514_vm5, %v2307_v40, 0.0 }
 0x3af   :  { %v2019_v42 = vpop.eup %2018  ;;  %579 = vadd.xlane.f32.xlu1 %v578_v41 }
 0x3b0   :  { %v575_v43 = vsel %vm514_vm5, %v2019_v42, 0.0 }
 0x3b1   :  { %v2312_v44 = vpop.eup %2020  ;;  %576 = vadd.xlane.f32.xlu0 %v575_v43 }
 0x3b2   :  { %v584_v45 = vsel %vm514_vm5, %v2312_v44, 0.0 }
 0x3b3   :  { %v2023_v46 = vpop.eup %2022  ;;  %585 = vadd.xlane.f32.xlu1 %v584_v45  ;;  %v2365_v45 = vld [vmem:[#allocation6 + $0xd0] ss:$0 sm:$0xff] }
 0x3b4   :  { %v581_v47 = vsel %vm514_vm5, %v2023_v46, 0.0 }
 0x3b5   :  { %582 = vadd.xlane.f32.xlu0 %v581_v47 }
 0x3c4   :  { %603 = vrot.lane.b32.xlu1 %v2251_v56, %s2173_s0 }
 0x3cb   :  { %605 = vrot.lane.b32.xlu0 %v2249_v53, %s2173_s0 }
 0x430   :  { %v568_v48 = vpop.xlane.xlu1 %567 }
 0x432   :  { %v565_v49 = vpop.xlane.xlu0 %564 }
 0x433   :  { %2024 = vrcp.f32 %v565_v49 }
 0x434   :  { %v574_v50 = vpop.xlane.xlu1 %573  ;;  %2026 = vrcp.f32 %v568_v48 }
 0x436   :  { %v571_v51 = vpop.xlane.xlu0 %570 }
 0x437   :  { %2028 = vrcp.f32 %v571_v51 }
 0x438   :  { %v580_v52 = vpop.xlane.xlu1 %579  ;;  %2030 = vrcp.f32 %v574_v50 }
 0x43a   :  { %v577_v54 = vpop.xlane.xlu0 %576 }
 0x43b   :  { %2032 = vrcp.f32 %v577_v54 }
 0x43c   :  { %2034 = vrcp.f32 %v580_v52  ;;  %v586_v55 = vpop.xlane.xlu1 %585 }
 0x43e   :  { %v583_v57 = vpop.xlane.xlu0 %582 }
 0x43f   :  { %2036 = vrcp.f32 %v583_v57 }
 0x440   :  { %v2025_v59 = vpop.eup %2024  ;;  %2038 = vrcp.f32 %v586_v55  ;;  %v604_v2 = vpop.permute.xlu1 %603 }
 0x441   :  { %v595_v56 = vmul.f32 %v2025_v59, %v2011_v34  ;;  %v2027_v60 = vpop.eup %2026 }
 0x442   :  { %v606_v53 = vpop.permute.xlu0 %605  ;;  %v596_v4 = vmul.f32 %v2027_v60, %v2009_v32 }
 0x443   :  { %1882 = vmatprep.subr.mxu1 %v606_v53  ;;  %1886 = vmatprep.mubr.msk.f32.mxu1 %vm514_vm5, %v595_v56 }
 0x444   :  { %v2029_v63 = vpop.eup %2028  ;;  %1883 = vmatpush3.msra.mxu1 %v606_v53 }
 0x445   :  { %1884 = vmatprep.subr.mxu1 %v604_v2  ;;  %v597_v5 = vmul.f32 %v2029_v63, %v2015_v38  ;;  %v2031_v7 = vpop.eup %2030 }
 0x446   :  { %1885 = vmatpush3.msra.mxu1 %v604_v2  ;;  %v598_v12 = vmul.f32 %v2031_v7, %v2013_v36 }
 0x447   :  { %1887 = vmatmul.mubr.msk.f32.vlgmr.msra.gmra.mxu1 %vm514_vm5, %v596_v4  ;;  %1898 = vmatprep.subr.mxu1 %v2322_v3 }
 0x448   :  { %v2033_v10 = vpop.eup %2032  ;;  %1889 = vmatprep.mubr.msk.f32.mxu1 %vm514_vm5, %v597_v5  ;;  %1899 = vmatpush3.msra.mxu1 %v2322_v3 }
 0x449   :  { %1900 = vmatprep.subr.mxu1 %v2324_v8  ;;  %v599_v14 = vmul.f32 %v2033_v10, %v2019_v42  ;;  %v2035_v15 = vpop.eup %2034 }
 0x44a   :  { %1901 = vmatpush3.msra.mxu1 %v2324_v8  ;;  %v600_v20 = vmul.f32 %v2035_v15, %v2307_v40 }
 0x44b   :  { %1890 = vmatmul.mubr.msk.f32.gmra.mxu1 %vm514_vm5, %v598_v12  ;;  %1902 = vmatprep.subr.mxu1 %v2330_v11 }
 0x44c   :  { %v2037_v19 = vpop.eup %2036  ;;  %1892 = vmatprep.mubr.msk.f32.mxu1 %vm514_vm5, %v599_v14  ;;  %1903 = vmatpush3.msra.mxu1 %v2330_v11 }
 0x44d   :  { %1904 = vmatprep.subr.mxu1 %v2334_v16  ;;  %v601_v18 = vmul.f32 %v2037_v19, %v2023_v46  ;;  %v2039_v21 = vpop.eup %2038 }
 0x44e   :  { %1905 = vmatpush3.msra.mxu1 %v2334_v16  ;;  %v602_v22 = vmul.f32 %v2039_v21, %v2312_v44 }
 0x44f   :  { %1893 = vmatmul.mubr.msk.f32.gmra.mxu1 %vm514_vm5, %v600_v20  ;;  %1920 = vmatprep.subr.msk.mxu1 %vm111_vm0, %v2257_v58 }
 0x450   :  { %1895 = vmatprep.mubr.msk.f32.mxu1 %vm514_vm5, %v601_v18 }
 0x453   :  { %1896 = vmatmul.mubr.msk.f32.gmra.mxu1 %vm514_vm5, %v602_v22 }
 0x507   :  { %v1888_v23 = vpop.f32.mrf.mxu1 }
 0x508   :  { %v739_v33 = vmul.f32 %v1888_v23, %v2269_v6 }
 0x509   :  { %v699_v24 = vpop.f32.mrf.mxu1 }
 0x50a   :  { %v738_v31 = vmul.f32 %v699_v24, %v2269_v6 }
 0x50b   :  { %v1891_v25 = vpop.f32.mrf.mxu1 }
 0x50c   :  { %v741_v29 = vmul.f32 %v1891_v25, %v2273_v9 }
 0x50d   :  { %v709_v26 = vpop.f32.mrf.mxu1 }
 0x50e   :  { %v740_v28 = vmul.f32 %v709_v26, %v2273_v9  ;;  %v743_v37 = vadd.f32 %v741_v29, %v739_v33 }
 0x50f   :  { %v1894_v27 = vpop.f32.mrf.mxu1 }
 0x510   :  { %v745_v34 = vmul.f32 %v1894_v27, %v2280_v13  ;;  %v742_v36 = vadd.f32 %v740_v28, %v738_v31  ;;  %v879_v27 = vstv %s1721_s13 }
 0x511   :  { %v719_v30 = vpop.f32.mrf.mxu1 }
 0x512   :  { %v744_v32 = vmul.f32 %v719_v30, %v2280_v13  ;;  %v747_v42 = vadd.f32 %v745_v34, %v743_v37  ;;  %v884_v34 = vstv %s1722_s14 }
 0x513   :  { %v1897_v35 = vpop.f32.mrf.mxu1 }
 0x514   :  { %v749_v38 = vmul.f32 %v1897_v35, %v2287_v17  ;;  %v746_v40 = vadd.f32 %v744_v32, %v742_v36 }
 0x515   :  { %v729_v39 = vpop.f32.mrf.mxu1 }
 0x516   :  { %v748_v41 = vmul.f32 %v729_v39, %v2287_v17  ;;  %v751_v44 = vadd.f32 %v749_v38, %v747_v42 }
 0x518   :  { %v750_v43 = vadd.f32 %v748_v41, %v746_v40 }
 0x51a   :  { %1906 = vmatprep.mubr.msk.f32.mxu1 %vm111_vm0, %v750_v43 }
 0x51b   :  { %1907 = vmatmul.mubr.msk.f32.vlgmr.msra.gmra.mxu1 %vm111_vm0, %v751_v44 }
 0x51c   :  { %1921 = vmatpush3.xpose.msk.msra.mxu1 %vm111_vm0, %v2257_v58 }
 0x51d   :  { %1922 = vmatprep.subr.msk.mxu1 %vm111_vm0, %v2261_v61 }
 0x520   :  { %1923 = vmatpush3.xpose.msk.msra.mxu1 %vm111_vm0, %v2261_v61 }
 0x5db   :  { %v1908_v46 = vpop.f32.mrf.mxu1 }
 0x5dc   :  { %v834_v47 = vadd.f32 %v1908_v46, %v2365_v45 }
 0x5dd   :  { %v828_v48 = vpop.f32.mrf.mxu1 }
 0x5de   :  { %v2369_v49 = vadd.f32 %v834_v47, %v2223_v1  ;;  %v829_v50 = vadd.f32 %v2365_v45, %v828_v48 }
 0x5e0   :  { %v2373_v51 = vadd.f32 %v829_v50, %v2218_v0  ;;  %v844_v52 = vsel %vm111_vm0, %v2369_v49, 0.0 }
 0x5e1   :  { %845 = vadd.xlane.f32.xlu0 %v844_v52  ;;  %v72_v52 = vld [vmem:[#allocation2 + $0x48] sm:$0xff] }
 0x5e2   :  { %v841_v54 = vsel %vm111_vm0, %v2373_v51, 0.0 }
 0x5e3   :  { %842 = vadd.xlane.f32.xlu1 %v841_v54 }
 0x66a   :  { %v846_v55 = vpop.xlane.xlu0 %845 }
 0x66b   :  { %v848_v57 = vmul.f32 0.03125, %v846_v55 }
 0x66c   :  { %v843_v59 = vpop.xlane.xlu1 %842 }
 0x66d   :  { %v850_v56 = vsub.f32 %v2369_v49, %v848_v57  ;;  %v847_v1 = vmul.f32 0.03125, %v843_v59  ;;  %v71_v57 = vld [vmem:[#allocation2 + $0x40] sm:$0xff] }
 0x66f   :  { %v849_v60 = vsub.f32 %v2373_v51, %v847_v1  ;;  %v852_v53 = vmul.f32 %v850_v56, %v850_v56  ;;  %v881_v29 = vmul.f32 %v879_v27, %v850_v56 }
 0x671   :  { %v856_v0 = vsel %vm111_vm0, %v852_v53, 0.0  ;;  %v851_v63 = vmul.f32 %v849_v60, %v849_v60  ;;  %v880_v30 = vmul.f32 %v879_v27, %v849_v60  ;;  %v74_v60 = vld [vmem:[#allocation2 + $0x58] sm:$0xff] }
 0x672   :  { %857 = vadd.xlane.f32.xlu1 %v856_v0 }
 0x673   :  { %v853_v2 = vsel %vm111_vm0, %v851_v63, 0.0 }
 0x674   :  { %854 = vadd.xlane.f32.xlu0 %v853_v2 }
 0x6fb   :  { %v858_v4 = vpop.xlane.xlu1 %857 }
 0x6fc   :  { %v860_v5 = vmul.f32 0.032258064, %v858_v4  ;;  %v73_v4 = vld [vmem:[#allocation2 + $0x50] sm:$0xff] }
 0x6fd   :  { %v855_v7 = vpop.xlane.xlu0 %854 }
 0x6fe   :  { %2040 = vrsqrt.f32 %v860_v5  ;;  %v859_v10 = vmul.f32 0.032258064, %v855_v7  ;;  %vm870_vm6 = vcmp.eq.f32.partialorder %v860_v5, inf  ;;  %v873_v15 = vand.u32 2147483648, %v860_v5 }
 0x6ff   :  { %vm872_vm7 = vcmp.eq.f32.partialorder %v860_v5, 0.0 }
 0x700   :  { %2042 = vrsqrt.f32 %v859_v10  ;;  %vm863_vm8 = vcmp.eq.f32.partialorder %v859_v10, inf  ;;  %v866_v23 = vand.u32 2147483648, %v859_v10  ;;  %vm865_vm9 = vcmp.eq.f32.partialorder %v859_v10, 0.0 }
 0x70b   :  { %v2041_v12 = vpop.eup %2040 }
 0x70c   :  { %v869_v14 = vmul.f32 %v2041_v12, %v860_v5 }
 0x70d   :  { %v2043_v19 = vpop.eup %2042 }
 0x70e   :  { %v871_v20 = vsel %vm870_vm6, %v860_v5, %v869_v14  ;;  %v862_v21 = vmul.f32 %v2043_v19, %v859_v10  ;;  %v76_v14 = vld [vmem:[#allocation2 + $0x68] sm:$0xff] }
 0x70f   :  { %v874_v18 = vsel %vm872_vm7, %v873_v15, %v871_v20 }
 0x710   :  { %v876_v22 = vadd.f32 1e-06, %v874_v18  ;;  %v864_v24 = vsel %vm863_vm8, %v859_v10, %v862_v21  ;;  %v75_v21 = vld [vmem:[#allocation2 + $0x60] sm:$0xff] }
 0x711   :  { %v867_v25 = vsel %vm865_vm9, %v866_v23, %v864_v24 }
 0x712   :  { %2044 = vrcp.f32 %v876_v22  ;;  %v875_v26 = vadd.f32 1e-06, %v867_v25 }
 0x714   :  { %2046 = vrcp.f32 %v875_v26  ;;  %v78_v26 = vld [vmem:[#allocation2 + $0x78] sm:$0xff] }
 0x71f   :  { %v2045_v28 = vpop.eup %2044 }
 0x720   :  { %v883_v32 = vmul.f32 %v2045_v28, %v881_v29 }
 0x721   :  { %v2047_v31 = vpop.eup %2046 }
 0x722   :  { %v882_v33 = vmul.f32 %v2047_v31, %v880_v30  ;;  %v886_v36 = vadd.f32 %v884_v34, %v883_v32  ;;  %v77_v31 = vld [vmem:[#allocation2 + $0x70] sm:$0xff] }
 0x724   :  { %v885_v35 = vadd.f32 %v884_v34, %v882_v33 }
 0x726   :  { %1917 = vmatprep.mubr.msk.f32.mxu0 %vm111_vm0, %v885_v35 }
 0x727   :  { %1918 = vmatmul.mubr.msk.f32.vlgmr.msra.gmra.mxu0 %vm111_vm0, %v886_v36 }
 0x7e7   :  { %v1919_v37 = vpop.f32.mrf.mxu0 }
 0x7e8   :  { %v965_v38 = vadd.f32 %v1919_v37, %v2263_v62 }
 0x7e9   :  { %v959_v39 = vpop.f32.mrf.mxu0 }
 0x7ea   :  { %v960_v40 = vadd.f32 %v2263_v62, %v959_v39  ;;  %v969_v42 = vmul.f32 %v965_v38, %v2269_v6  ;;  %v971_v44 = vmul.f32 %v965_v38, %v2273_v9  ;;  %v973_v62 = vmul.f32 %v965_v38, %v2280_v13 }
 0x7eb   :  { %v975_v48 = vmul.f32 %v965_v38, %v2287_v17 }
 0x7ec   :  { %v968_v41 = vmul.f32 %v960_v40, %v2269_v6  ;;  %v970_v43 = vmul.f32 %v960_v40, %v2273_v9  ;;  %v972_v46 = vmul.f32 %v960_v40, %v2280_v13  ;;  %v974_v47 = vmul.f32 %v960_v40, %v2287_v17 }
 0x7ee   :  { %1924 = vmatprep.mubr.msk.f32.mxu1 %vm111_vm0, %v968_v41 }
 0x7ef   :  { %1925 = vmatmul.mubr.msk.f32.vlgmr.msra.gmra.mxu1 %vm111_vm0, %v969_v42 }
 0x7f0   :  { %1927 = vmatprep.mubr.msk.f32.mxu1 %vm111_vm0, %v970_v43 }
 0x7f3   :  { %1928 = vmatmul.mubr.msk.f32.gmra.mxu1 %vm111_vm0, %v971_v44 }
 0x7f4   :  { %1930 = vmatprep.mubr.msk.f32.mxu1 %vm111_vm0, %v972_v46 }
 0x7f7   :  { %1931 = vmatmul.mubr.msk.f32.gmra.mxu1 %vm111_vm0, %v973_v62 }
 0x7f8   :  { %1933 = vmatprep.mubr.msk.f32.mxu1 %vm111_vm0, %v974_v47 }
 0x7fb   :  { %1934 = vmatmul.mubr.msk.f32.gmra.mxu1 %vm111_vm0, %v975_v48 }
 0x8af   :  { %v1926_v50 = vpop.f32.mrf.mxu1 }
 0x8b0   :  { %v1112_v54 = vmul.f32 0.35355338, %v1926_v50 }
 0x8b1   :  { %v1072_v55 = vpop.f32.mrf.mxu1 }
 0x8b2   :  { %v1111_v59 = vmul.f32 0.35355338, %v1072_v55  ;;  %v1120_v56 = vadd.f32 %v1112_v54, %v72_v52 }
 0x8b3   :  { %v1929_v1 = vpop.f32.mrf.mxu1 }
 0x8b4   :  { %v1114_v53 = vmul.f32 0.35355338, %v1929_v1  ;;  %v1130_v0 = vsel %vm514_vm5, %v1120_v56, -inf  ;;  %v1119_v63 = vadd.f32 %v1111_v59, %v71_v57 }
 0x8b5   :  { %1131 = vmax.xlane.f32.xlu1 %v1130_v0  ;;  %v1082_v2 = vpop.f32.mrf.mxu1 }
 0x8b6   :  { %v1113_v5 = vmul.f32 0.35355338, %v1082_v2  ;;  %v1127_v7 = vsel %vm514_vm5, %v1119_v63, -inf  ;;  %v1122_v10 = vadd.f32 %v1114_v53, %v74_v60 }
 0x8b7   :  { %1128 = vmax.xlane.f32.xlu0 %v1127_v7  ;;  %v1932_v12 = vpop.f32.mrf.mxu1 }
 0x8b8   :  { %v1116_v15 = vmul.f32 0.35355338, %v1932_v12  ;;  %v1136_v19 = vsel %vm514_vm5, %v1122_v10, -inf  ;;  %v1121_v20 = vadd.f32 %v1113_v5, %v73_v4 }
 0x8b9   :  { %1137 = vmax.xlane.f32.xlu1 %v1136_v19  ;;  %v1092_v18 = vpop.f32.mrf.mxu1 }
 0x8ba   :  { %v1115_v22 = vmul.f32 0.35355338, %v1092_v18  ;;  %v1133_v23 = vsel %vm514_vm5, %v1121_v20, -inf  ;;  %v1124_v24 = vadd.f32 %v1116_v15, %v76_v14 }
 0x8bb   :  { %1134 = vmax.xlane.f32.xlu0 %v1133_v23  ;;  %v1935_v25 = vpop.f32.mrf.mxu1 }
 0x8bc   :  { %v1118_v27 = vmul.f32 0.35355338, %v1935_v25  ;;  %v1142_v28 = vsel %vm514_vm5, %v1124_v24, -inf  ;;  %v1123_v29 = vadd.f32 %v1115_v22, %v75_v21 }
 0x8bd   :  { %1143 = vmax.xlane.f32.xlu1 %v1142_v28  ;;  %v1102_v30 = vpop.f32.mrf.mxu1 }
 0x8be   :  { %v1117_v32 = vmul.f32 0.35355338, %v1102_v30  ;;  %v1139_v33 = vsel %vm514_vm5, %v1123_v29, -inf  ;;  %v1126_v34 = vadd.f32 %v1118_v27, %v78_v26 }
 0x8bf   :  { %1140 = vmax.xlane.f32.xlu0 %v1139_v33 }
 0x8c0   :  { %v1148_v35 = vsel %vm514_vm5, %v1126_v34, -inf  ;;  %v1125_v36 = vadd.f32 %v1117_v32, %v77_v31 }
 0x8c1   :  { %1149 = vmax.xlane.f32.xlu1 %v1148_v35 }
 0x8c2   :  { %v1145_v37 = vsel %vm514_vm5, %v1125_v36, -inf }
 0x8c3   :  { %1146 = vmax.xlane.f32.xlu0 %v1145_v37 }
 0x93e   :  { %v1132_v38 = vpop.xlane.xlu1 %1131 }
 0x93f   :  { %v1152_v39 = vsub.f32 %v1120_v56, %v1132_v38 }
 0x940   :  { %v1129_v40 = vpop.xlane.xlu0 %1128 }
 0x941   :  { %v1161_v41 = vmul.f32 1.442695, %v1152_v39  ;;  %v1151_v42 = vsub.f32 %v1119_v63, %v1129_v40 }
 0x942   :  { %v1138_v43 = vpop.xlane.xlu1 %1137 }
 0x943   :  { %2048 = vpow2.f32 %v1161_v41  ;;  %v1159_v44 = vmul.f32 1.442695, %v1151_v42  ;;  %v1154_v46 = vsub.f32 %v1122_v10, %v1138_v43 }
 0x944   :  { %v1135_v62 = vpop.xlane.xlu0 %1134 }
 0x945   :  { %2050 = vpow2.f32 %v1159_v44  ;;  %v1165_v47 = vmul.f32 1.442695, %v1154_v46  ;;  %v1153_v48 = vsub.f32 %v1121_v20, %v1135_v62 }
 0x946   :  { %v1144_v50 = vpop.xlane.xlu1 %1143 }
 0x947   :  { %2052 = vpow2.f32 %v1165_v47  ;;  %v1163_v52 = vmul.f32 1.442695, %v1153_v48  ;;  %v1156_v54 = vsub.f32 %v1124_v24, %v1144_v50 }
 0x948   :  { %v1141_v55 = vpop.xlane.xlu0 %1140 }
 0x949   :  { %2054 = vpow2.f32 %v1163_v52  ;;  %v1169_v57 = vmul.f32 1.442695, %v1156_v54  ;;  %v1155_v59 = vsub.f32 %v1123_v29, %v1141_v55 }
 0x94a   :  { %v1150_v56 = vpop.xlane.xlu1 %1149 }
 0x94b   :  { %2056 = vpow2.f32 %v1169_v57  ;;  %v1167_v1 = vmul.f32 1.442695, %v1155_v59  ;;  %v1158_v60 = vsub.f32 %v1126_v34, %v1150_v56 }
 0x94c   :  { %v1147_v53 = vpop.xlane.xlu0 %1146 }
 0x94d   :  { %2058 = vpow2.f32 %v1167_v1  ;;  %v1173_v0 = vmul.f32 1.442695, %v1158_v60  ;;  %v1157_v63 = vsub.f32 %v1125_v36, %v1147_v53 }
 0x94f   :  { %2060 = vpow2.f32 %v1173_v0  ;;  %v1171_v2 = vmul.f32 1.442695, %v1157_v63 }
 0x950   :  { %v2049_v4 = vpop.eup %2048 }
 0x951   :  { %2062 = vpow2.f32 %v1171_v2  ;;  %v1178_v5 = vsel %vm514_vm5, %v2049_v4, 0.0 }
 0x952   :  { %v2051_v7 = vpop.eup %2050  ;;  %1179 = vadd.xlane.f32.xlu1 %v1178_v5 }
 0x953   :  { %v1175_v10 = vsel %vm514_vm5, %v2051_v7, 0.0 }
 0x954   :  { %v2053_v12 = vpop.eup %2052  ;;  %1176 = vadd.xlane.f32.xlu0 %v1175_v10 }
 0x955   :  { %v1184_v14 = vsel %vm514_vm5, %v2053_v12, 0.0 }
 0x956   :  { %v2055_v15 = vpop.eup %2054  ;;  %1185 = vadd.xlane.f32.xlu1 %v1184_v14 }
 0x957   :  { %v1181_v19 = vsel %vm514_vm5, %v2055_v15, 0.0 }
 0x958   :  { %v2057_v20 = vpop.eup %2056  ;;  %1182 = vadd.xlane.f32.xlu0 %v1181_v19 }
 0x959   :  { %v1190_v18 = vsel %vm514_vm5, %v2057_v20, 0.0 }
 0x95a   :  { %v2059_v21 = vpop.eup %2058  ;;  %1191 = vadd.xlane.f32.xlu1 %v1190_v18 }
 0x95b   :  { %v1187_v22 = vsel %vm514_vm5, %v2059_v21, 0.0 }
 0x95c   :  { %v2061_v23 = vpop.eup %2060  ;;  %1188 = vadd.xlane.f32.xlu0 %v1187_v22 }
 0x95d   :  { %v1196_v24 = vsel %vm514_vm5, %v2061_v23, 0.0 }
 0x95e   :  { %v2063_v25 = vpop.eup %2062  ;;  %1197 = vadd.xlane.f32.xlu1 %v1196_v24 }
 0x95f   :  { %v1193_v26 = vsel %vm514_vm5, %v2063_v25, 0.0 }
 0x960   :  { %1194 = vadd.xlane.f32.xlu0 %v1193_v26 }
 0x96f   :  { %1215 = vrot.lane.b32.xlu1 %v2261_v61, %s2173_s0 }
 0x976   :  { %1217 = vrot.lane.b32.xlu0 %v2257_v58, %s2173_s0 }
 0x9db   :  { %v1180_v27 = vpop.xlane.xlu1 %1179 }
 0x9dd   :  { %v1177_v28 = vpop.xlane.xlu0 %1176 }
 0x9de   :  { %2064 = vrcp.f32 %v1177_v28 }
 0x9df   :  { %v1186_v29 = vpop.xlane.xlu1 %1185  ;;  %2066 = vrcp.f32 %v1180_v27 }
 0x9e1   :  { %v1183_v30 = vpop.xlane.xlu0 %1182 }
 0x9e2   :  { %2068 = vrcp.f32 %v1183_v30  ;;  %v93_v30 = vld [vmem:[#allocation6 + $0x70] sm:$0xff] }
 0x9e3   :  { %v1192_v31 = vpop.xlane.xlu1 %1191  ;;  %2070 = vrcp.f32 %v1186_v29  ;;  %v94_v29 = vld [vmem:[#allocation6 + $0x78] sm:$0xff] }
 0x9e4   :  { %1963 = vmatprep.subr.mxu1 %v94_v29 }
 0x9e5   :  { %v1189_v32 = vpop.xlane.xlu0 %1188  ;;  %1964 = vmatpush3.msra.mxu1 %v94_v29 }
 0x9e6   :  { %2072 = vrcp.f32 %v1189_v32  ;;  %1965 = vmatprep.subr.mxu1 %v93_v30  ;;  %v91_v32 = vld [vmem:[#allocation6 + $0x60] sm:$0xff] }
 0x9e7   :  { %2074 = vrcp.f32 %v1192_v31  ;;  %v1198_v33 = vpop.xlane.xlu1 %1197  ;;  %v92_v31 = vld [vmem:[#allocation6 + $0x68] sm:$0xff]  ;;  %1966 = vmatpush3.msra.mxu1 %v93_v30 }
 0x9e8   :  { %1967 = vmatprep.subr.mxu1 %v92_v31 }
 0x9e9   :  { %v1195_v34 = vpop.xlane.xlu0 %1194  ;;  %1968 = vmatpush3.msra.mxu1 %v92_v31 }
 0x9ea   :  { %2076 = vrcp.f32 %v1195_v34  ;;  %1969 = vmatprep.subr.mxu1 %v91_v32  ;;  %v101_v34 = vld [vmem:[#allocation6 + $0xb0] sm:$0xff] }
 0x9eb   :  { %v2065_v35 = vpop.eup %2064  ;;  %2078 = vrcp.f32 %v1198_v33  ;;  %v1216_v38 = vpop.permute.xlu1 %1215  ;;  %1970 = vmatpush3.msra.mxu1 %v91_v32  ;;  %v102_v33 = vld [vmem:[#allocation6 + $0xb8] sm:$0xff] }
 0x9ec   :  { %v1207_v61 = vmul.f32 %v2065_v35, %v2051_v7  ;;  %v2067_v36 = vpop.eup %2066  ;;  %v100_v35 = vld [vmem:[#allocation6 + $0xa8] sm:$0xff] }
 0x9ed   :  { %v1218_v58 = vpop.permute.xlu0 %1217  ;;  %v1208_v39 = vmul.f32 %v2067_v36, %v2049_v4 }
 0x9ee   :  { %1936 = vmatprep.subr.mxu0 %v1218_v58  ;;  %1940 = vmatprep.mubr.msk.f32.mxu0 %vm514_vm5, %v1207_v61  ;;  %v99_v61 = vld [vmem:[#allocation6 + $0xa0] sm:$0xff] }
 0x9ef   :  { %v2069_v37 = vpop.eup %2068  ;;  %1937 = vmatpush3.msra.mxu0 %v1218_v58 }
 0x9f0   :  { %1938 = vmatprep.subr.mxu0 %v1216_v38  ;;  %v1209_v40 = vmul.f32 %v2069_v37, %v2055_v15  ;;  %v2071_v41 = vpop.eup %2070 }
 0x9f1   :  { %1939 = vmatpush3.msra.mxu0 %v1216_v38  ;;  %v1210_v43 = vmul.f32 %v2071_v41, %v2053_v12 }
 0x9f2   :  { %1941 = vmatmul.mubr.msk.f32.vlgmr.msra.gmra.mxu0 %vm514_vm5, %v1208_v39  ;;  %1952 = vmatprep.subr.mxu0 %v2322_v3 }
 0x9f3   :  { %v2073_v42 = vpop.eup %2072  ;;  %1943 = vmatprep.mubr.msk.f32.mxu0 %vm514_vm5, %v1209_v40  ;;  %1953 = vmatpush3.msra.mxu0 %v2322_v3 }
 0x9f4   :  { %v1211_v44 = vmul.f32 %v2073_v42, %v2059_v21  ;;  %1954 = vmatprep.subr.mxu0 %v2324_v8  ;;  %v2075_v46 = vpop.eup %2074 }
 0x9f5   :  { %1955 = vmatpush3.msra.mxu0 %v2324_v8  ;;  %v1212_v47 = vmul.f32 %v2075_v46, %v2057_v20 }
 0x9f6   :  { %1944 = vmatmul.mubr.msk.f32.gmra.mxu0 %vm514_vm5, %v1210_v43  ;;  %1956 = vmatprep.subr.mxu0 %v2330_v11 }
 0x9f7   :  { %v2077_v62 = vpop.eup %2076  ;;  %1946 = vmatprep.mubr.msk.f32.mxu0 %vm514_vm5, %v1211_v44  ;;  %1957 = vmatpush3.msra.mxu0 %v2330_v11 }
 0x9f8   :  { %v1213_v48 = vmul.f32 %v2077_v62, %v2063_v25  ;;  %1958 = vmatprep.subr.mxu0 %v2334_v16  ;;  %v2079_v3 = vpop.eup %2078 }
 0x9f9   :  { %1959 = vmatpush3.msra.mxu0 %v2334_v16  ;;  %v1214_v8 = vmul.f32 %v2079_v3, %v2061_v23 }
 0x9fa   :  { %1947 = vmatmul.mubr.msk.f32.gmra.mxu0 %vm514_vm5, %v1212_v47  ;;  %1974 = vmatprep.subr.mxu0 %v102_v33 }
 0x9fb   :  { %1949 = vmatprep.mubr.msk.f32.mxu0 %vm514_vm5, %v1213_v48 }
 0x9fe   :  { %1950 = vmatmul.mubr.msk.f32.gmra.mxu0 %vm514_vm5, %v1214_v8 }
 0xab2   :  { %v1942_v50 = vpop.f32.mrf.mxu0 }
 0xab3   :  { %v1351_v60 = vmul.f32 %v1942_v50, %v2269_v6  ;;  %v1487_v50 = vstv %s1745_s15 }
 0xab4   :  { %v1311_v52 = vpop.f32.mrf.mxu0 }
 0xab5   :  { %v1350_v1 = vmul.f32 %v1311_v52, %v2269_v6 }
 0xab6   :  { %v1945_v54 = vpop.f32.mrf.mxu0 }
 0xab7   :  { %v1353_v59 = vmul.f32 %v1945_v54, %v2273_v9 }
 0xab8   :  { %v1321_v55 = vpop.f32.mrf.mxu0 }
 0xab9   :  { %v1352_v11 = vmul.f32 %v1321_v55, %v2273_v9  ;;  %v1355_v2 = vadd.f32 %v1353_v59, %v1351_v60  ;;  %v98_v60 = vld [vmem:[#allocation6 + $0x98] sm:$0xff] }
 0xaba   :  { %v1948_v57 = vpop.f32.mrf.mxu0 }
 0xabb   :  { %v1357_v53 = vmul.f32 %v1948_v57, %v2280_v13  ;;  %v1354_v63 = vadd.f32 %v1352_v11, %v1350_v1 }
 0xabc   :  { %v1331_v56 = vpop.f32.mrf.mxu0 }
 0xabd   :  { %v1356_v16 = vmul.f32 %v1331_v56, %v2280_v13  ;;  %v1359_v12 = vadd.f32 %v1357_v53, %v1355_v2  ;;  %v1492_v56 = vstv %s1746_s16  ;;  %v97_v53 = vld [vmem:[#allocation6 + $0x90] sm:$0xff]  ;;  %v1747_v2 = vld [vmem:[#allocation6 + $0xd8] ss:$0 sm:$0xff] }
 0xabe   :  { %v1951_v0 = vpop.f32.mrf.mxu0 }
 0xabf   :  { %v1361_v4 = vmul.f32 %v1951_v0, %v2287_v17  ;;  %v1358_v7 = vadd.f32 %v1356_v16, %v1354_v63  ;;  %v96_v0 = vld [vmem:[#allocation6 + $0x88] sm:$0xff]  ;;  %v95_v63 = vld [vmem:[#allocation6 + $0x80] sm:$0xff] }
 0xac0   :  { %v1341_v5 = vpop.f32.mrf.mxu0 }
 0xac1   :  { %v1360_v10 = vmul.f32 %v1341_v5, %v2287_v17  ;;  %v1363_v14 = vadd.f32 %v1361_v4, %v1359_v12 }
 0xac3   :  { %v1362_v9 = vadd.f32 %v1360_v10, %v1358_v7 }
 0xac5   :  { %1960 = vmatprep.mubr.msk.f32.mxu0 %vm111_vm0, %v1362_v9 }
 0xac6   :  { %1961 = vmatmul.mubr.msk.f32.vlgmr.msra.gmra.mxu0 %vm111_vm0, %v1363_v14  ;;  %v1750_v14 = vld [vmem:[#allocation6 + $0xe0] ss:$0 sm:$0xff] }
 0xac7   :  { %1975 = vmatpush3.msra.mxu0 %v102_v33 }
 0xac8   :  { %1976 = vmatprep.subr.mxu0 %v101_v34 }
 0xac9   :  { %1977 = vmatpush3.msra.mxu0 %v101_v34 }
 0xaca   :  { %1978 = vmatprep.subr.mxu0 %v100_v35 }
 0xacb   :  { %1979 = vmatpush3.msra.mxu0 %v100_v35 }
 0xacc   :  { %1980 = vmatprep.subr.mxu0 %v99_v61 }
 0xacd   :  { %1981 = vmatpush3.msra.mxu0 %v99_v61 }
 0xace   :  { %1982 = vmatprep.subr.mxu0 %v98_v60 }
 0xacf   :  { %1983 = vmatpush3.msra.mxu0 %v98_v60 }
 0xad0   :  { %1984 = vmatprep.subr.mxu0 %v97_v53 }
 0xad1   :  { %1985 = vmatpush3.msra.mxu0 %v97_v53 }
 0xad2   :  { %1986 = vmatprep.subr.mxu0 %v96_v0 }
 0xad3   :  { %1987 = vmatpush3.msra.mxu0 %v96_v0 }
 0xad4   :  { %1988 = vmatprep.subr.mxu0 %v95_v63 }
 0xad5   :  { %1989 = vmatpush3.msra.mxu0 %v95_v63 }
 0xb86   :  { %v1962_v15 = vpop.f32.mrf.mxu0 }
 0xb87   :  { %v1442_v6 = vadd.f32 %v1962_v15, %v2365_v45 }
 0xb88   :  { %v1436_v13 = vpop.f32.mrf.mxu0 }
 0xb89   :  { %v2451_v19 = vadd.f32 %v1442_v6, %v2369_v49  ;;  %v1437_v20 = vadd.f32 %v2365_v45, %v1436_v13 }
 0xb8b   :  { %v2455_v18 = vadd.f32 %v1437_v20, %v2373_v51  ;;  %v1452_v17 = vsel %vm111_vm0, %v2451_v19, 0.0 }
 0xb8c   :  { %1453 = vadd.xlane.f32.xlu0 %v1452_v17 }
 0xb8d   :  { %v1449_v21 = vsel %vm111_vm0, %v2455_v18, 0.0 }
 0xb8e   :  { %1450 = vadd.xlane.f32.xlu1 %v1449_v21 }
 0xc15   :  { %v1454_v22 = vpop.xlane.xlu0 %1453 }
 0xc16   :  { %v1456_v23 = vmul.f32 0.03125, %v1454_v22 }
 0xc17   :  { %v1451_v24 = vpop.xlane.xlu1 %1450 }
 0xc18   :  { %v1458_v25 = vsub.f32 %v2451_v19, %v1456_v23  ;;  %v1455_v49 = vmul.f32 0.03125, %v1451_v24 }
 0xc1a   :  { %v1457_v26 = vsub.f32 %v2455_v18, %v1455_v49  ;;  %v1460_v45 = vmul.f32 %v1458_v25, %v1458_v25  ;;  %v1489_v54 = vmul.f32 %v1487_v50, %v1458_v25 }
 0xc1c   :  { %v1464_v51 = vsel %vm111_vm0, %v1460_v45, 0.0  ;;  %v1459_v27 = vmul.f32 %v1457_v26, %v1457_v26  ;;  %v1488_v55 = vmul.f32 %v1487_v50, %v1457_v26 }
 0xc1d   :  { %1465 = vadd.xlane.f32.xlu1 %v1464_v51 }
 0xc1e   :  { %v1461_v28 = vsel %vm111_vm0, %v1459_v27, 0.0 }
 0xc1f   :  { %1462 = vadd.xlane.f32.xlu0 %v1461_v28 }
 0xca6   :  { %v1466_v36 = vpop.xlane.xlu1 %1465 }
 0xca7   :  { %v1468_v58 = vmul.f32 0.032258064, %v1466_v36 }
 0xca8   :  { %v1463_v37 = vpop.xlane.xlu0 %1462 }
 0xca9   :  { %2080 = vrsqrt.f32 %v1468_v58  ;;  %v1467_v38 = vmul.f32 0.032258064, %v1463_v37  ;;  %vm1478_vm10 = vcmp.eq.f32.partialorder %v1468_v58, inf  ;;  %v1481_v41 = vand.u32 2147483648, %v1468_v58 }
 0xcaa   :  { %vm1480_vm11 = vcmp.eq.f32.partialorder %v1468_v58, 0.0 }
 0xcab   :  { %2082 = vrsqrt.f32 %v1467_v38  ;;  %vm1471_vm12 = vcmp.eq.f32.partialorder %v1467_v38, inf  ;;  %v1474_v47 = vand.u32 2147483648, %v1467_v38  ;;  %vm1473_vm13 = vcmp.eq.f32.partialorder %v1467_v38, 0.0 }
 0xcb6   :  { %v2081_v39 = vpop.eup %2080 }
 0xcb7   :  { %v1477_v40 = vmul.f32 %v2081_v39, %v1468_v58 }
 0xcb8   :  { %v2083_v42 = vpop.eup %2082 }
 0xcb9   :  { %v1479_v43 = vsel %vm1478_vm10, %v1468_v58, %v1477_v40  ;;  %v1470_v46 = vmul.f32 %v2083_v42, %v1467_v38 }
 0xcba   :  { %v1482_v44 = vsel %vm1480_vm11, %v1481_v41, %v1479_v43 }
 0xcbb   :  { %v1484_v62 = vadd.f32 1e-06, %v1482_v44  ;;  %v1472_v48 = vsel %vm1471_vm12, %v1467_v38, %v1470_v46 }
 0xcbc   :  { %v1475_v3 = vsel %vm1473_vm13, %v1474_v47, %v1472_v48 }
 0xcbd   :  { %2084 = vrcp.f32 %v1484_v62  ;;  %v1483_v8 = vadd.f32 1e-06, %v1475_v3 }
 0xcbf   :  { %2086 = vrcp.f32 %v1483_v8 }
 0xcca   :  { %v2085_v52 = vpop.eup %2084 }
 0xccb   :  { %v1491_v11 = vmul.f32 %v2085_v52, %v1489_v54 }
 0xccc   :  { %v2087_v57 = vpop.eup %2086 }
 0xccd   :  { %v1490_v59 = vmul.f32 %v2087_v57, %v1488_v55  ;;  %v1494_v16 = vadd.f32 %v1492_v56, %v1491_v11 }
 0xccf   :  { %v1493_v1 = vadd.f32 %v1492_v56, %v1490_v59 }
 0xcd1   :  { %1971 = vmatprep.mubr.msk.f32.mxu1 %vm111_vm0, %v1493_v1 }
 0xcd2   :  { %1972 = vmatmul.mubr.msk.f32.vlgmr.msra.gmra.mxu1 %vm111_vm0, %v1494_v16 }
 0xd92   :  { %v1973_v4 = vpop.f32.mrf.mxu1 }
 0xd93   :  { %v1577_v5 = vadd.f32 %v1973_v4, %v1747_v2 }
 0xd94   :  { %v1571_v7 = vpop.f32.mrf.mxu1 }
 0xd95   :  { %v1572_v10 = vadd.f32 %v1747_v2, %v1571_v7  ;;  %v1581_v9 = vmax.f32 %v1577_v5, 0.0 }
 0xd97   :  { %v1580_v12 = vmax.f32 %v1572_v10, 0.0 }
 0xd99   :  { %1990 = vmatprep.mubr.msk.f32.mxu0 %vm1586_vm14, %v1580_v12 }
 0xd9a   :  { %1991 = vmatmul.mubr.msk.f32.vlgmr.msra.gmra.mxu0 %vm1586_vm14, %v1581_v9 }
 0xe5a   :  { %v1992_v15 = vpop.f32.mrf.mxu0 }
 0xe5b   :  { %v1665_v6 = vadd.f32 %v1992_v15, %v1750_v14 }
 0xe5c   :  { %v1659_v13 = vpop.f32.mrf.mxu0 }
 0xe5d   :  { %v1669_v20 = vadd.f32 %v1665_v6, %v2451_v19  ;;  %v1660_v17 = vadd.f32 %v1750_v14, %v1659_v13 }
 0xe5f   :  { %1671 = vst.msk [vmem:[#allocation9 + $0x8] sm:$0xff] %vm111_vm0, %v1669_v20  ;;  %v1668_v21 = vadd.f32 %v1660_v17, %v2455_v18 }
 0xe61   :  { %1670 = vst.msk [vmem:[#allocation9] sm:$0xff] %vm111_vm0, %v1668_v21 }
 0xe62   :  { %2151 = shalt.err (!%p2148_p5)
}
 0xe63   :  { %1683 = dma.vmem_to_hbm [thread:$0]  %s1678_s20, 256, %s2481_s4, [#allocation4], %s2169_s18, %s2169_s18, %s2170_s19  }
 0xe64   :  { %2166 = dma.done.wait [#allocation4], 256  }
 0xe65   :  { %2167 = vsyncadd [#allocation4], 4294967040 }
 0xe66   :  { %1687 = vsyncpa [#allocation3], 1 }
 0xe67   :  { %1688 = vsyncpa [#allocation7], 1 }
 0xe68   :  { %1689 = vsyncpa [#allocation4], 1 }
 0xe69   :  { %1690 = vsyncpa [#allocation5], 1 }

</bundles_post_ra>
